<compile_context>
chip_gen: v6e
topology: v6e:2x2x1
jax: 0.10.0
libtpu: 0.0.40
codegen_flags: <defaults>
</compile_context>

<pallas_src>
import functools
import numpy as np
import jax
import jax.numpy as jnp
from jax import lax
from jax.experimental import pallas as pl
from jax.experimental.pallas import tpu as pltpu


def _pick_tile(n, target):
    """Largest batch tile <= target that divides n, preferring sublane-aligned
    tiles.  Falls back to the full batch when no aligned divisor exists (the
    per-row VMEM footprint of these kernels is tiny, so that is safe)."""
    if n <= target:
        return n
    for t in range(target, 7, -1):
        if n % t == 0 and t % 8 == 0:
            return t
    return n


# ----------------------------------------------------------------------------
# Kernel 1: fused visual encoder (patchify + patch-mean + projection + scale).
#   grid = (B/tb, Hp/kh); each step loads a (tb, C, kh*ph, W) NCHW strip,
#   folds patch columns (lane groups of pw) and patch rows (sublane groups of
#   ph) into a (tb, C, ph, pw) running patch-sum scratch, and on the last step
#   projects to (tb, D) bf16 features with exp(logit_scale)/num_patches folded
#   into the weight.  Only lane-dense (tb, D) blocks are written to HBM.
# ----------------------------------------------------------------------------
def _visual_encoder_kernel(x_ref, w_ref, o_ref, acc_ref, *, ph, pw, cdt):
    hp = pl.program_id(1)

    @pl.when(hp == 0)
    def _init():
        acc_ref[...] = jnp.zeros_like(acc_ref)

    x = x_ref[...].astype(jnp.float32)              # (tb, C, kh*ph, W)
    wp_count = x.shape[-1] // pw
    kh = x.shape[-2] // ph

    # Fold patch columns (lane groups of pw).
    part = x[..., 0:pw]
    for wp in range(1, wp_count):                   # static unroll
        part = part + x[..., wp * pw:(wp + 1) * pw]  # (tb, C, kh*ph, pw)
    # Fold the kh patch rows of this strip (8-aligned sublane slices, ph % 8 == 0).
    strip = part[:, :, 0:ph, :]
    for k in range(1, kh):                          # static unroll
        strip = strip + part[:, :, k * ph:(k + 1) * ph, :]
    acc_ref[...] += strip                           # (tb, C, ph, pw) patch sums, f32

    @pl.when(hp == pl.num_programs(1) - 1)
    def _finalize():
        tb = acc_ref.shape[0]
        c_dim = acc_ref.shape[1]
        d_dim = w_ref.shape[-1]
        feats = jnp.zeros((tb, d_dim), jnp.float32)
        # (tb, K) @ (K, D) projection expressed as C*ph row-group MXU matmuls so
        # no in-kernel relayout of the (tb, C, ph, pw) accumulator is required.
        # TODO(synk): switch to a single flat (tb, K) @ (K, D) matmul via a
        # lane-dense flattened accumulator once the relayout reshape is taken.
        for c in range(c_dim):
            for i in range(ph):
                r = c * ph + i
                a = acc_ref[:, c, i, :].astype(cdt)              # (tb, pw)
                feats = feats + jnp.dot(a, w_ref[r * pw:(r + 1) * pw, :],
                                        preferred_element_type=jnp.float32)
        o_ref[...] = feats.astype(o_ref.dtype)      # lane-dense (tb, D) bf16 store


def visual_encode(pixels, w_scaled, patch, *, compute_dtype=jnp.bfloat16,
                  batch_tile=64, target_strip_bytes=2 << 20):
    B, C, H, W = pixels.shape
    ph = pw = patch
    assert H % ph == 0 and W % pw == 0, "image must be divisible by patch size"
    assert ph % 8 == 0, "patch height must be sublane-aligned (multiple of 8)"
    Hp = H // ph
    K, D = w_scaled.shape
    assert K == C * ph * pw

    tb = _pick_tile(B, batch_tile)
    # Block several patch rows per grid step so each strip is MB-sized
    # (grid-step overhead otherwise dominates this HBM-read-bound kernel).
    row_bytes = tb * C * ph * W * pixels.dtype.itemsize
    kh = max(1, min(Hp, target_strip_bytes // max(row_bytes, 1)))
    while Hp % kh:
        kh -= 1

    return pl.pallas_call(
        functools.partial(_visual_encoder_kernel, ph=ph, pw=pw, cdt=compute_dtype),
        out_shape=jax.ShapeDtypeStruct((B, D), compute_dtype),
        grid_spec=pltpu.PrefetchScalarGridSpec(
            num_scalar_prefetch=0,
            grid=(B // tb, Hp // kh),
            in_specs=[pl.BlockSpec((tb, C, kh * ph, W), lambda b, hp: (b, 0, hp, 0)),
                      pl.BlockSpec((K, D), lambda b, hp: (0, 0))],   # resident weight
            out_specs=pl.BlockSpec((tb, D), lambda b, hp: (b, 0)),
            scratch_shapes=[pltpu.VMEM((tb, C, ph, pw), jnp.float32)],
        ),
        compiler_params=pltpu.CompilerParams(
            dimension_semantics=("parallel", "arbitrary")),
    )(pixels, w_scaled)


# ----------------------------------------------------------------------------
# Kernel 2: fused text encoder (token gather + mean-pool + projection).
#   input_ids arrive as a (tb, T) int32 VMEM block; bag-of-tokens counts are
#   built with vectorized compares against a lane iota (no per-row scalar
#   loop), then one counts @ W_fused MXU matmul where W_fused =
#   tok_embed @ w_text / T is pre-fused in the wrapper.
# TODO(synk): for a production-size vocab W_fused / counts do not fit VMEM;
#   that case needs a manual DMA row-gather of tok_embed instead.
# ----------------------------------------------------------------------------
def _text_encoder_kernel(ids_ref, wf_ref, o_ref, *, vocab, cdt):
    ids = ids_ref[...]                                         # (tb, T) int32
    tb, seq_len = ids.shape
    lane_ids = lax.broadcasted_iota(jnp.int32, (tb, vocab), 1)
    counts = jnp.zeros((tb, vocab), jnp.float32)
    for t in range(seq_len):                                   # static unroll, vectorized over tb & vocab
        counts = counts + (ids[:, t:t + 1] == lane_ids).astype(jnp.float32)
    # counts are exact small ints (<= T < 256) -> lossless in bf16.
    o_ref[...] = jnp.dot(counts.astype(cdt), wf_ref[...],
                         preferred_element_type=jnp.float32).astype(o_ref.dtype)


def text_encode(input_ids, w_fused, vocab, *, compute_dtype=jnp.bfloat16,
                batch_tile=256):
    B, T = input_ids.shape
    V, D = w_fused.shape
    assert V == vocab
    tb = _pick_tile(B, batch_tile)
    return pl.pallas_call(
        functools.partial(_text_encoder_kernel, vocab=V, cdt=compute_dtype),
        out_shape=jax.ShapeDtypeStruct((B, D), compute_dtype),
        grid_spec=pltpu.PrefetchScalarGridSpec(
            num_scalar_prefetch=0,
            grid=(B // tb,),
            in_specs=[pl.BlockSpec((tb, T), lambda b: (b, 0)),   # ids tile in VMEM
                      pl.BlockSpec((V, D), lambda b: (0, 0))],   # fused weight, resident
            out_specs=pl.BlockSpec((tb, D), lambda b: (b, 0)),
        ),
        compiler_params=pltpu.CompilerParams(dimension_semantics=("parallel",)),
    )(input_ids.astype(jnp.int32), w_fused)


# ----------------------------------------------------------------------------
# Kernel 3: CLIP similarity head.
#   1-D grid over image-feature tiles, full bf16 text features held resident
#   (constant index map) so they are not re-streamed per tile.  One MXU matmul
#   contracting the feature dims (no operand transpose); logits_per_text is the
#   transposed tile written through its own out BlockSpec.  exp(logit_scale)
#   is already folded into the image features, so there is no scale operand.
# TODO(synk): for very large B (resident (Bp, D) block > VMEM budget) fall back
#   to a 2-D grid that re-streams text-feature tiles.
# ----------------------------------------------------------------------------
def _clip_head_kernel(img_ref, txt_ref, lpi_ref, lpt_ref):
    sims = lax.dot_general(img_ref[...], txt_ref[...],
                           dimension_numbers=(((1,), (1,)), ((), ())),
                           preferred_element_type=jnp.float32)   # (tile, Bp)
    lpi_ref[...] = sims
    lpt_ref[...] = sims.T


def clip_head(image_features, text_features, *, tile=256):
    # tile=256 fills the 256-wide MXU on v6e/v7x; use 128 on v5e.
    B, D = image_features.shape
    assert text_features.shape == (B, D)
    if B <= tile:
        tile_i, Bp = B, B                      # small batch: no padding, full-dim blocks
    else:
        tile_i = tile
        Bp = ((B + tile_i - 1) // tile_i) * tile_i
    img = image_features if Bp == B else jnp.pad(image_features, ((0, Bp - B), (0, 0)))
    txt = text_features if Bp == B else jnp.pad(text_features, ((0, Bp - B), (0, 0)))

    lpi, lpt = pl.pallas_call(
        _clip_head_kernel,
        out_shape=(jax.ShapeDtypeStruct((Bp, Bp), jnp.float32),
                   jax.ShapeDtypeStruct((Bp, Bp), jnp.float32)),
        grid_spec=pltpu.PrefetchScalarGridSpec(
            num_scalar_prefetch=0,
            grid=(Bp // tile_i,),
            in_specs=[pl.BlockSpec((tile_i, D), lambda i: (i, 0)),
                      pl.BlockSpec((Bp, D), lambda i: (0, 0))],      # resident text feats
            out_specs=(pl.BlockSpec((tile_i, Bp), lambda i: (i, 0)),
                       pl.BlockSpec((Bp, tile_i), lambda i: (0, i))),
        ),
        compiler_params=pltpu.CompilerParams(dimension_semantics=("parallel",)),
    )(img, txt)
    if Bp != B:
        lpi, lpt = lpi[:B, :B], lpt[:B, :B]
    return lpi, lpt


# ----------------------------------------------------------------------------
# Model wrapper (synthetic encoders + the CLIP head from the PyTorch spec).
# ----------------------------------------------------------------------------
class CLIPPallas:
    def __init__(self, key, img_channels=4, patch=8, embed_dim=128, vocab=32,
                 text_embed=64, compute_dtype=jnp.bfloat16):
        k1, k2, k3 = jax.random.split(key, 3)
        self.patch = patch
        self.vocab = vocab
        self.compute_dtype = compute_dtype
        k_vis = img_channels * patch * patch
        self.w_visual = (jax.random.normal(k1, (k_vis, embed_dim), jnp.float32)
                         * (1.0 / np.sqrt(k_vis)))
        self.tok_embed = jax.random.normal(k2, (vocab, text_embed), jnp.float32) * 0.02
        self.w_text = (jax.random.normal(k3, (text_embed, embed_dim), jnp.float32)
                       * (1.0 / np.sqrt(text_embed)))
        # nn.Parameter(torch.ones([]) * np.log(1 / 0.07))
        self.logit_scale = jnp.array(np.log(1.0 / 0.07), dtype=jnp.float32)

    def visual_encoder(self, pixel_values, logit_scale_exp):
        B, C, H, W = pixel_values.shape
        num_patches = (H // self.patch) * (W // self.patch)
        # Fold the patch-mean (1/num_patches) AND exp(logit_scale) into the
        # projection weight: zero in-kernel cost, and the head needs no scale.
        w_scaled = (self.w_visual * (logit_scale_exp / num_patches)
                    ).astype(self.compute_dtype)
        return visual_encode(pixel_values, w_scaled, self.patch,
                             compute_dtype=self.compute_dtype)      # (B, D) bf16

    def text_encoder(self, input_ids):
        T = input_ids.shape[1]
        # Pre-fuse tok_embed @ w_text and fold the 1/T of the token mean.
        w_fused = (jnp.dot(self.tok_embed, self.w_text) * (1.0 / T)
                   ).astype(self.compute_dtype)
        return text_encode(input_ids, w_fused, self.vocab,
                           compute_dtype=self.compute_dtype)        # (B, D) bf16

    def __call__(self, img_input, text_input):
        scale = jnp.exp(self.logit_scale)
        image_features = self.visual_encoder(logit_scale_exp=scale, **img_input)
        text_features = self.text_encoder(**text_input)
        return clip_head(image_features, text_features)


if __name__ == "__main__":
    key = jax.random.PRNGKey(0)
    k_params, k_img, k_txt = jax.random.split(key, 3)
    model = CLIPPallas(k_params)

    B, C, H, W, T = 2, 4, 16, 16, 8
    pixel_values = jax.random.normal(k_img, (B, C, H, W), jnp.float32)    # NCHW
    input_ids = jax.random.randint(k_txt, (B, T), 0, 32, jnp.int32)

    logits_per_image, logits_per_text = model({"pixel_values": pixel_values},
                                              {"input_ids": input_ids})
    jax.block_until_ready((logits_per_image, logits_per_text))

    # Pure-JAX reference mirroring the kernels' bf16 MXU casts (f32 accumulation).
    cdt = model.compute_dtype
    ph = pw = model.patch
    Hp, Wp = H // ph, W // pw
    scale_ref = jnp.exp(model.logit_scale)

    pooled = pixel_values.reshape(B, C, Hp, ph, Wp, pw).sum(axis=(2, 4))   # patch sums
    w_scaled_ref = (model.w_visual * (scale_ref / (Hp * Wp))).astype(cdt)
    feat_img = jnp.dot(pooled.reshape(B, C * ph * pw).astype(cdt), w_scaled_ref,
                       preferred_element_type=jnp.float32).astype(cdt)

    w_fused_ref = (jnp.dot(model.tok_embed, model.w_text) * (1.0 / T)).astype(cdt)
    counts = (input_ids[:, :, None] == jnp.arange(model.vocab)[None, None, :]
              ).astype(jnp.float32).sum(axis=1)
    feat_txt = jnp.dot(counts.astype(cdt), w_fused_ref,
                       preferred_element_type=jnp.float32).astype(cdt)

    lpi_ref = jnp.dot(feat_img.astype(jnp.float32), feat_txt.astype(jnp.float32).T)
    lpt_ref = lpi_ref.T

    np.testing.assert_allclose(np.asarray(logits_per_image), np.asarray(lpi_ref),
                               rtol=2e-2, atol=2e-2)
    np.testing.assert_allclose(np.asarray(logits_per_text), np.asarray(lpt_ref),
                               rtol=2e-2, atol=2e-2)
    print("KERNEL_OK")
</pallas_src>

<mosaic_0001>
module attributes {stable_mosaic.version = 11 : i64} {
  func.func @_visual_encoder_kernel(%arg0: i32, %arg1: i32, %arg2: memref<2x4x16x16xf32, #tpu.memory_space<vmem>>, %arg3: memref<256x128xbf16, #tpu.memory_space<vmem>>, %arg4: memref<2x128xbf16, #tpu.memory_space<vmem>>, %arg5: memref<2x4x8x8xf32, #tpu.memory_space<vmem>>) attributes {dimension_semantics = [#tpu.dimension_semantics<parallel>, #tpu.dimension_semantics<arbitrary>], iteration_bounds = array<i64: 1, 1>, scalar_prefetch = 0 : i64, scratch_operands = 1 : i64, tpu.core_type = #tpu.core_type<tc>, window_params = [{transform_indices = @transform_0, window_bounds = array<i64: 2, 4, 16, 16>}, {pipeline_mode = #tpu.pipeline_mode<synchronous>, transform_indices = @transform_1, window_bounds = array<i64: 256, 128>}, {transform_indices = @transform_2, window_bounds = array<i64: 2, 128>}]} {
    %c0_i32 = arith.constant 0 : i32
    %0 = arith.cmpi eq, %arg1, %c0_i32 : i32
    %1 = arith.extui %0 : i1 to i32
    %c0_i32_0 = arith.constant 0 : i32
    %2 = arith.cmpi ne, %1, %c0_i32_0 : i32
    scf.if %2 {
      %cst = arith.constant 0.000000e+00 : f32
      %16 = vector.broadcast %cst : f32 to vector<2x4x8x8xf32>
      %c0_14 = arith.constant 0 : index
      %c0_15 = arith.constant 0 : index
      %c0_16 = arith.constant 0 : index
      %c0_17 = arith.constant 0 : index
      %17 = vector.load %arg5[%c0_14, %c0_15, %c0_16, %c0_17] : memref<2x4x8x8xf32, #tpu.memory_space<vmem>>, vector<2x4x8x8xf32>
      tpu.vector_store %arg5[%c0_14, %c0_15, %c0_16, %c0_17], %16 {strides = array<i32>} : memref<2x4x8x8xf32, #tpu.memory_space<vmem>>, vector<2x4x8x8xf32>,
    } else {
    }
    %c0 = arith.constant 0 : index
    %c0_1 = arith.constant 0 : index
    %c0_2 = arith.constant 0 : index
    %c0_3 = arith.constant 0 : index
    %3 = vector.load %arg2[%c0, %c0_1, %c0_2, %c0_3] : memref<2x4x16x16xf32, #tpu.memory_space<vmem>>, vector<2x4x16x16xf32>
    %4 = vector.extract_strided_slice %3 {offsets = [0, 0, 0, 0], sizes = [2, 4, 16, 8], strides = [1, 1, 1, 1]} : vector<2x4x16x16xf32> to vector<2x4x16x8xf32>
    %5 = vector.extract_strided_slice %3 {offsets = [0, 0, 0, 8], sizes = [2, 4, 16, 8], strides = [1, 1, 1, 1]} : vector<2x4x16x16xf32> to vector<2x4x16x8xf32>
    %6 = arith.addf %4, %5 : vector<2x4x16x8xf32>
    %7 = vector.extract_strided_slice %6 {offsets = [0, 0, 0, 0], sizes = [2, 4, 8, 8], strides = [1, 1, 1, 1]} : vector<2x4x16x8xf32> to vector<2x4x8x8xf32>
    %8 = vector.extract_strided_slice %6 {offsets = [0, 0, 8, 0], sizes = [2, 4, 8, 8], strides = [1, 1, 1, 1]} : vector<2x4x16x8xf32> to vector<2x4x8x8xf32>
    %9 = arith.addf %7, %8 : vector<2x4x8x8xf32>
    %c0_4 = arith.constant 0 : index
    %c0_5 = arith.constant 0 : index
    %c0_6 = arith.constant 0 : index
    %c0_7 = arith.constant 0 : index
    %10 = vector.load %arg5[%c0_4, %c0_5, %c0_6, %c0_7] : memref<2x4x8x8xf32, #tpu.memory_space<vmem>>, vector<2x4x8x8xf32>
    %11 = arith.addf %10, %9 : vector<2x4x8x8xf32>
    %c0_8 = arith.constant 0 : index
    %c0_9 = arith.constant 0 : index
    %c0_10 = arith.constant 0 : index
    %c0_11 = arith.constant 0 : index
    %12 = vector.load %arg5[%c0_8, %c0_9, %c0_10, %c0_11] : memref<2x4x8x8xf32, #tpu.memory_space<vmem>>, vector<2x4x8x8xf32>
    tpu.vector_store %arg5[%c0_8, %c0_9, %c0_10, %c0_11], %11 {strides = array<i32>} : memref<2x4x8x8xf32, #tpu.memory_space<vmem>>, vector<2x4x8x8xf32>,
    %c0_i32_12 = arith.constant 0 : i32
    %13 = arith.cmpi eq, %arg1, %c0_i32_12 : i32
    %14 = arith.extui %13 : i1 to i32
    %c0_i32_13 = arith.constant 0 : i32
    %15 = arith.cmpi ne, %14, %c0_i32_13 : i32
    scf.if %15 {
      %cst = arith.constant 0.000000e+00 : f32
      %16 = vector.broadcast %cst : f32 to vector<2x128xf32>
      %c0_14 = arith.constant 0 : index
      %c0_15 = arith.constant 0 : index
      %c0_16 = arith.constant 0 : index
      %c0_17 = arith.constant 0 : index
      %17 = vector.load %arg5[%c0_14, %c0_15, %c0_16, %c0_17] : memref<2x4x8x8xf32, #tpu.memory_space<vmem>>, vector<2x1x1x8xf32>
      %18 = vector.shape_cast %17 : vector<2x1x1x8xf32> to vector<2x8xf32>
      %19 = arith.truncf %18 : vector<2x8xf32> to vector<2x8xbf16>
      %c0_18 = arith.constant 0 : index
      %c0_19 = arith.constant 0 : index
      %20 = vector.load %arg3[%c0_18, %c0_19] : memref<256x128xbf16, #tpu.memory_space<vmem>>, vector<8x128xbf16>
      %cst_20 = arith.constant dense<0.000000e+00> : vector<2x128xf32>
      %21 = tpu.matmul %19, %20, %cst_20 {dimension_numbers = #tpu.dot_dimension_numbers<[1], [0], [0], [1], [0, 0, 1, 1], [], []>} : vector<2x8xbf16>, vector<8x128xbf16>, vector<2x128xf32> -> vector<2x128xf32>
      %22 = arith.addf %16, %21 : vector<2x128xf32>
      %c0_21 = arith.constant 0 : index
      %c0_22 = arith.constant 0 : index
      %c1 = arith.constant 1 : index
      %c0_23 = arith.constant 0 : index
      %23 = vector.load %arg5[%c0_21, %c0_22, %c1, %c0_23] : memref<2x4x8x8xf32, #tpu.memory_space<vmem>>, vector<2x1x1x8xf32>
      %24 = vector.shape_cast %23 : vector<2x1x1x8xf32> to vector<2x8xf32>
      %25 = arith.truncf %24 : vector<2x8xf32> to vector<2x8xbf16>
      %c8 = arith.constant 8 : index
      %c0_24 = arith.constant 0 : index
      %26 = vector.load %arg3[%c8, %c0_24] : memref<256x128xbf16, #tpu.memory_space<vmem>>, vector<8x128xbf16>
      %cst_25 = arith.constant dense<0.000000e+00> : vector<2x128xf32>
      %27 = tpu.matmul %25, %26, %cst_25 {dimension_numbers = #tpu.dot_dimension_numbers<[1], [0], [0], [1], [0, 0, 1, 1], [], []>} : vector<2x8xbf16>, vector<8x128xbf16>, vector<2x128xf32> -> vector<2x128xf32>
      %28 = arith.addf %22, %27 : vector<2x128xf32>
      %c0_26 = arith.constant 0 : index
      %c0_27 = arith.constant 0 : index
      %c2 = arith.constant 2 : index
      %c0_28 = arith.constant 0 : index
      %29 = vector.load %arg5[%c0_26, %c0_27, %c2, %c0_28] : memref<2x4x8x8xf32, #tpu.memory_space<vmem>>, vector<2x1x1x8xf32>
      %30 = vector.shape_cast %29 : vector<2x1x1x8xf32> to vector<2x8xf32>
      %31 = arith.truncf %30 : vector<2x8xf32> to vector<2x8xbf16>
      %c16 = arith.constant 16 : index
      %c0_29 = arith.constant 0 : index
      %32 = vector.load %arg3[%c16, %c0_29] : memref<256x128xbf16, #tpu.memory_space<vmem>>, vector<8x128xbf16>
      %cst_30 = arith.constant dense<0.000000e+00> : vector<2x128xf32>
      %33 = tpu.matmul %31, %32, %cst_30 {dimension_numbers = #tpu.dot_dimension_numbers<[1], [0], [0], [1], [0, 0, 1, 1], [], []>} : vector<2x8xbf16>, vector<8x128xbf16>, vector<2x128xf32> -> vector<2x128xf32>
      %34 = arith.addf %28, %33 : vector<2x128xf32>
      %c0_31 = arith.constant 0 : index
      %c0_32 = arith.constant 0 : index
      %c3 = arith.constant 3 : index
      %c0_33 = arith.constant 0 : index
      %35 = vector.load %arg5[%c0_31, %c0_32, %c3, %c0_33] : memref<2x4x8x8xf32, #tpu.memory_space<vmem>>, vector<2x1x1x8xf32>
      %36 = vector.shape_cast %35 : vector<2x1x1x8xf32> to vector<2x8xf32>
      %37 = arith.truncf %36 : vector<2x8xf32> to vector<2x8xbf16>
      %c24 = arith.constant 24 : index
      %c0_34 = arith.constant 0 : index
      %38 = vector.load %arg3[%c24, %c0_34] : memref<256x128xbf16, #tpu.memory_space<vmem>>, vector<8x128xbf16>
      %cst_35 = arith.constant dense<0.000000e+00> : vector<2x128xf32>
      %39 = tpu.matmul %37, %38, %cst_35 {dimension_numbers = #tpu.dot_dimension_numbers<[1], [0], [0], [1], [0, 0, 1, 1], [], []>} : vector<2x8xbf16>, vector<8x128xbf16>, vector<2x128xf32> -> vector<2x128xf32>
      %40 = arith.addf %34, %39 : vector<2x128xf32>
      %c0_36 = arith.constant 0 : index
      %c0_37 = arith.constant 0 : index
      %c4 = arith.constant 4 : index
      %c0_38 = arith.constant 0 : index
      %41 = vector.load %arg5[%c0_36, %c0_37, %c4, %c0_38] : memref<2x4x8x8xf32, #tpu.memory_space<vmem>>, vector<2x1x1x8xf32>
      %42 = vector.shape_cast %41 : vector<2x1x1x8xf32> to vector<2x8xf32>
      %43 = arith.truncf %42 : vector<2x8xf32> to vector<2x8xbf16>
      %c32 = arith.constant 32 : index
      %c0_39 = arith.constant 0 : index
      %44 = vector.load %arg3[%c32, %c0_39] : memref<256x128xbf16, #tpu.memory_space<vmem>>, vector<8x128xbf16>
      %cst_40 = arith.constant dense<0.000000e+00> : vector<2x128xf32>
      %45 = tpu.matmul %43, %44, %cst_40 {dimension_numbers = #tpu.dot_dimension_numbers<[1], [0], [0], [1], [0, 0, 1, 1], [], []>} : vector<2x8xbf16>, vector<8x128xbf16>, vector<2x128xf32> -> vector<2x128xf32>
      %46 = arith.addf %40, %45 : vector<2x128xf32>
      %c0_41 = arith.constant 0 : index
      %c0_42 = arith.constant 0 : index
      %c5 = arith.constant 5 : index
      %c0_43 = arith.constant 0 : index
      %47 = vector.load %arg5[%c0_41, %c0_42, %c5, %c0_43] : memref<2x4x8x8xf32, #tpu.memory_space<vmem>>, vector<2x1x1x8xf32>
      %48 = vector.shape_cast %47 : vector<2x1x1x8xf32> to vector<2x8xf32>
      %49 = arith.truncf %48 : vector<2x8xf32> to vector<2x8xbf16>
      %c40 = arith.constant 40 : index
      %c0_44 = arith.constant 0 : index
      %50 = vector.load %arg3[%c40, %c0_44] : memref<256x128xbf16, #tpu.memory_space<vmem>>, vector<8x128xbf16>
      %cst_45 = arith.constant dense<0.000000e+00> : vector<2x128xf32>
      %51 = tpu.matmul %49, %50, %cst_45 {dimension_numbers = #tpu.dot_dimension_numbers<[1], [0], [0], [1], [0, 0, 1, 1], [], []>} : vector<2x8xbf16>, vector<8x128xbf16>, vector<2x128xf32> -> vector<2x128xf32>
      %52 = arith.addf %46, %51 : vector<2x128xf32>
      %c0_46 = arith.constant 0 : index
      %c0_47 = arith.constant 0 : index
      %c6 = arith.constant 6 : index
      %c0_48 = arith.constant 0 : index
      %53 = vector.load %arg5[%c0_46, %c0_47, %c6, %c0_48] : memref<2x4x8x8xf32, #tpu.memory_space<vmem>>, vector<2x1x1x8xf32>
      %54 = vector.shape_cast %53 : vector<2x1x1x8xf32> to vector<2x8xf32>
      %55 = arith.truncf %54 : vector<2x8xf32> to vector<2x8xbf16>
      %c48 = arith.constant 48 : index
      %c0_49 = arith.constant 0 : index
      %56 = vector.load %arg3[%c48, %c0_49] : memref<256x128xbf16, #tpu.memory_space<vmem>>, vector<8x128xbf16>
      %cst_50 = arith.constant dense<0.000000e+00> : vector<2x128xf32>
      %57 = tpu.matmul %55, %56, %cst_50 {dimension_numbers = #tpu.dot_dimension_numbers<[1], [0], [0], [1], [0, 0, 1, 1], [], []>} : vector<2x8xbf16>, vector<8x128xbf16>, vector<2x128xf32> -> vector<2x128xf32>
      %58 = arith.addf %52, %57 : vector<2x128xf32>
      %c0_51 = arith.constant 0 : index
      %c0_52 = arith.constant 0 : index
      %c7 = arith.constant 7 : index
      %c0_53 = arith.constant 0 : index
      %59 = vector.load %arg5[%c0_51, %c0_52, %c7, %c0_53] : memref<2x4x8x8xf32, #tpu.memory_space<vmem>>, vector<2x1x1x8xf32>
      %60 = vector.shape_cast %59 : vector<2x1x1x8xf32> to vector<2x8xf32>
      %61 = arith.truncf %60 : vector<2x8xf32> to vector<2x8xbf16>
      %c56 = arith.constant 56 : index
      %c0_54 = arith.constant 0 : index
      %62 = vector.load %arg3[%c56, %c0_54] : memref<256x128xbf16, #tpu.memory_space<vmem>>, vector<8x128xbf16>
      %cst_55 = arith.constant dense<0.000000e+00> : vector<2x128xf32>
      %63 = tpu.matmul %61, %62, %cst_55 {dimension_numbers = #tpu.dot_dimension_numbers<[1], [0], [0], [1], [0, 0, 1, 1], [], []>} : vector<2x8xbf16>, vector<8x128xbf16>, vector<2x128xf32> -> vector<2x128xf32>
      %64 = arith.addf %58, %63 : vector<2x128xf32>
      %c0_56 = arith.constant 0 : index
      %c1_57 = arith.constant 1 : index
      %c0_58 = arith.constant 0 : index
      %c0_59 = arith.constant 0 : index
      %65 = vector.load %arg5[%c0_56, %c1_57, %c0_58, %c0_59] : memref<2x4x8x8xf32, #tpu.memory_space<vmem>>, vector<2x1x1x8xf32>
      %66 = vector.shape_cast %65 : vector<2x1x1x8xf32> to vector<2x8xf32>
      %67 = arith.truncf %66 : vector<2x8xf32> to vector<2x8xbf16>
      %c64 = arith.constant 64 : index
      %c0_60 = arith.constant 0 : index
      %68 = vector.load %arg3[%c64, %c0_60] : memref<256x128xbf16, #tpu.memory_space<vmem>>, vector<8x128xbf16>
      %cst_61 = arith.constant dense<0.000000e+00> : vector<2x128xf32>
      %69 = tpu.matmul %67, %68, %cst_61 {dimension_numbers = #tpu.dot_dimension_numbers<[1], [0], [0], [1], [0, 0, 1, 1], [], []>} : vector<2x8xbf16>, vector<8x128xbf16>, vector<2x128xf32> -> vector<2x128xf32>
      %70 = arith.addf %64, %69 : vector<2x128xf32>
      %c0_62 = arith.constant 0 : index
      %c1_63 = arith.constant 1 : index
      %c1_64 = arith.constant 1 : index
      %c0_65 = arith.constant 0 : index
      %71 = vector.load %arg5[%c0_62, %c1_63, %c1_64, %c0_65] : memref<2x4x8x8xf32, #tpu.memory_space<vmem>>, vector<2x1x1x8xf32>
      %72 = vector.shape_cast %71 : vector<2x1x1x8xf32> to vector<2x8xf32>
      %73 = arith.truncf %72 : vector<2x8xf32> to vector<2x8xbf16>
      %c72 = arith.constant 72 : index
      %c0_66 = arith.constant 0 : index
      %74 = vector.load %arg3[%c72, %c0_66] : memref<256x128xbf16, #tpu.memory_space<vmem>>, vector<8x128xbf16>
      %cst_67 = arith.constant dense<0.000000e+00> : vector<2x128xf32>
      %75 = tpu.matmul %73, %74, %cst_67 {dimension_numbers = #tpu.dot_dimension_numbers<[1], [0], [0], [1], [0, 0, 1, 1], [], []>} : vector<2x8xbf16>, vector<8x128xbf16>, vector<2x128xf32> -> vector<2x128xf32>
      %76 = arith.addf %70, %75 : vector<2x128xf32>
      %c0_68 = arith.constant 0 : index
      %c1_69 = arith.constant 1 : index
      %c2_70 = arith.constant 2 : index
      %c0_71 = arith.constant 0 : index
      %77 = vector.load %arg5[%c0_68, %c1_69, %c2_70, %c0_71] : memref<2x4x8x8xf32, #tpu.memory_space<vmem>>, vector<2x1x1x8xf32>
      %78 = vector.shape_cast %77 : vector<2x1x1x8xf32> to vector<2x8xf32>
      %79 = arith.truncf %78 : vector<2x8xf32> to vector<2x8xbf16>
      %c80 = arith.constant 80 : index
      %c0_72 = arith.constant 0 : index
      %80 = vector.load %arg3[%c80, %c0_72] : memref<256x128xbf16, #tpu.memory_space<vmem>>, vector<8x128xbf16>
      %cst_73 = arith.constant dense<0.000000e+00> : vector<2x128xf32>
      %81 = tpu.matmul %79, %80, %cst_73 {dimension_numbers = #tpu.dot_dimension_numbers<[1], [0], [0], [1], [0, 0, 1, 1], [], []>} : vector<2x8xbf16>, vector<8x128xbf16>, vector<2x128xf32> -> vector<2x128xf32>
      %82 = arith.addf %76, %81 : vector<2x128xf32>
      %c0_74 = arith.constant 0 : index
      %c1_75 = arith.constant 1 : index
      %c3_76 = arith.constant 3 : index
      %c0_77 = arith.constant 0 : index
      %83 = vector.load %arg5[%c0_74, %c1_75, %c3_76, %c0_77] : memref<2x4x8x8xf32, #tpu.memory_space<vmem>>, vector<2x1x1x8xf32>
      %84 = vector.shape_cast %83 : vector<2x1x1x8xf32> to vector<2x8xf32>
      %85 = arith.truncf %84 : vector<2x8xf32> to vector<2x8xbf16>
      %c88 = arith.constant 88 : index
      %c0_78 = arith.constant 0 : index
      %86 = vector.load %arg3[%c88, %c0_78] : memref<256x128xbf16, #tpu.memory_space<vmem>>, vector<8x128xbf16>
      %cst_79 = arith.constant dense<0.000000e+00> : vector<2x128xf32>
      %87 = tpu.matmul %85, %86, %cst_79 {dimension_numbers = #tpu.dot_dimension_numbers<[1], [0], [0], [1], [0, 0, 1, 1], [], []>} : vector<2x8xbf16>, vector<8x128xbf16>, vector<2x128xf32> -> vector<2x128xf32>
      %88 = arith.addf %82, %87 : vector<2x128xf32>
      %c0_80 = arith.constant 0 : index
      %c1_81 = arith.constant 1 : index
      %c4_82 = arith.constant 4 : index
      %c0_83 = arith.constant 0 : index
      %89 = vector.load %arg5[%c0_80, %c1_81, %c4_82, %c0_83] : memref<2x4x8x8xf32, #tpu.memory_space<vmem>>, vector<2x1x1x8xf32>
      %90 = vector.shape_cast %89 : vector<2x1x1x8xf32> to vector<2x8xf32>
      %91 = arith.truncf %90 : vector<2x8xf32> to vector<2x8xbf16>
      %c96 = arith.constant 96 : index
      %c0_84 = arith.constant 0 : index
      %92 = vector.load %arg3[%c96, %c0_84] : memref<256x128xbf16, #tpu.memory_space<vmem>>, vector<8x128xbf16>
      %cst_85 = arith.constant dense<0.000000e+00> : vector<2x128xf32>
      %93 = tpu.matmul %91, %92, %cst_85 {dimension_numbers = #tpu.dot_dimension_numbers<[1], [0], [0], [1], [0, 0, 1, 1], [], []>} : vector<2x8xbf16>, vector<8x128xbf16>, vector<2x128xf32> -> vector<2x128xf32>
      %94 = arith.addf %88, %93 : vector<2x128xf32>
      %c0_86 = arith.constant 0 : index
      %c1_87 = arith.constant 1 : index
      %c5_88 = arith.constant 5 : index
      %c0_89 = arith.constant 0 : index
      %95 = vector.load %arg5[%c0_86, %c1_87, %c5_88, %c0_89] : memref<2x4x8x8xf32, #tpu.memory_space<vmem>>, vector<2x1x1x8xf32>
      %96 = vector.shape_cast %95 : vector<2x1x1x8xf32> to vector<2x8xf32>
      %97 = arith.truncf %96 : vector<2x8xf32> to vector<2x8xbf16>
      %c104 = arith.constant 104 : index
      %c0_90 = arith.constant 0 : index
      %98 = vector.load %arg3[%c104, %c0_90] : memref<256x128xbf16, #tpu.memory_space<vmem>>, vector<8x128xbf16>
      %cst_91 = arith.constant dense<0.000000e+00> : vector<2x128xf32>
      %99 = tpu.matmul %97, %98, %cst_91 {dimension_numbers = #tpu.dot_dimension_numbers<[1], [0], [0], [1], [0, 0, 1, 1], [], []>} : vector<2x8xbf16>, vector<8x128xbf16>, vector<2x128xf32> -> vector<2x128xf32>
      %100 = arith.addf %94, %99 : vector<2x128xf32>
      %c0_92 = arith.constant 0 : index
      %c1_93 = arith.constant 1 : index
      %c6_94 = arith.constant 6 : index
      %c0_95 = arith.constant 0 : index
      %101 = vector.load %arg5[%c0_92, %c1_93, %c6_94, %c0_95] : memref<2x4x8x8xf32, #tpu.memory_space<vmem>>, vector<2x1x1x8xf32>
      %102 = vector.shape_cast %101 : vector<2x1x1x8xf32> to vector<2x8xf32>
      %103 = arith.truncf %102 : vector<2x8xf32> to vector<2x8xbf16>
      %c112 = arith.constant 112 : index
      %c0_96 = arith.constant 0 : index
      %104 = vector.load %arg3[%c112, %c0_96] : memref<256x128xbf16, #tpu.memory_space<vmem>>, vector<8x128xbf16>
      %cst_97 = arith.constant dense<0.000000e+00> : vector<2x128xf32>
      %105 = tpu.matmul %103, %104, %cst_97 {dimension_numbers = #tpu.dot_dimension_numbers<[1], [0], [0], [1], [0, 0, 1, 1], [], []>} : vector<2x8xbf16>, vector<8x128xbf16>, vector<2x128xf32> -> vector<2x128xf32>
      %106 = arith.addf %100, %105 : vector<2x128xf32>
      %c0_98 = arith.constant 0 : index
      %c1_99 = arith.constant 1 : index
      %c7_100 = arith.constant 7 : index
      %c0_101 = arith.constant 0 : index
      %107 = vector.load %arg5[%c0_98, %c1_99, %c7_100, %c0_101] : memref<2x4x8x8xf32, #tpu.memory_space<vmem>>, vector<2x1x1x8xf32>
      %108 = vector.shape_cast %107 : vector<2x1x1x8xf32> to vector<2x8xf32>
      %109 = arith.truncf %108 : vector<2x8xf32> to vector<2x8xbf16>
      %c120 = arith.constant 120 : index
      %c0_102 = arith.constant 0 : index
      %110 = vector.load %arg3[%c120, %c0_102] : memref<256x128xbf16, #tpu.memory_space<vmem>>, vector<8x128xbf16>
      %cst_103 = arith.constant dense<0.000000e+00> : vector<2x128xf32>
      %111 = tpu.matmul %109, %110, %cst_103 {dimension_numbers = #tpu.dot_dimension_numbers<[1], [0], [0], [1], [0, 0, 1, 1], [], []>} : vector<2x8xbf16>, vector<8x128xbf16>, vector<2x128xf32> -> vector<2x128xf32>
      %112 = arith.addf %106, %111 : vector<2x128xf32>
      %c0_104 = arith.constant 0 : index
      %c2_105 = arith.constant 2 : index
      %c0_106 = arith.constant 0 : index
      %c0_107 = arith.constant 0 : index
      %113 = vector.load %arg5[%c0_104, %c2_105, %c0_106, %c0_107] : memref<2x4x8x8xf32, #tpu.memory_space<vmem>>, vector<2x1x1x8xf32>
      %114 = vector.shape_cast %113 : vector<2x1x1x8xf32> to vector<2x8xf32>
      %115 = arith.truncf %114 : vector<2x8xf32> to vector<2x8xbf16>
      %c128 = arith.constant 128 : index
      %c0_108 = arith.constant 0 : index
      %116 = vector.load %arg3[%c128, %c0_108] : memref<256x128xbf16, #tpu.memory_space<vmem>>, vector<8x128xbf16>
      %cst_109 = arith.constant dense<0.000000e+00> : vector<2x128xf32>
      %117 = tpu.matmul %115, %116, %cst_109 {dimension_numbers = #tpu.dot_dimension_numbers<[1], [0], [0], [1], [0, 0, 1, 1], [], []>} : vector<2x8xbf16>, vector<8x128xbf16>, vector<2x128xf32> -> vector<2x128xf32>
      %118 = arith.addf %112, %117 : vector<2x128xf32>
      %c0_110 = arith.constant 0 : index
      %c2_111 = arith.constant 2 : index
      %c1_112 = arith.constant 1 : index
      %c0_113 = arith.constant 0 : index
      %119 = vector.load %arg5[%c0_110, %c2_111, %c1_112, %c0_113] : memref<2x4x8x8xf32, #tpu.memory_space<vmem>>, vector<2x1x1x8xf32>
      %120 = vector.shape_cast %119 : vector<2x1x1x8xf32> to vector<2x8xf32>
      %121 = arith.truncf %120 : vector<2x8xf32> to vector<2x8xbf16>
      %c136 = arith.constant 136 : index
      %c0_114 = arith.constant 0 : index
      %122 = vector.load %arg3[%c136, %c0_114] : memref<256x128xbf16, #tpu.memory_space<vmem>>, vector<8x128xbf16>
      %cst_115 = arith.constant dense<0.000000e+00> : vector<2x128xf32>
      %123 = tpu.matmul %121, %122, %cst_115 {dimension_numbers = #tpu.dot_dimension_numbers<[1], [0], [0], [1], [0, 0, 1, 1], [], []>} : vector<2x8xbf16>, vector<8x128xbf16>, vector<2x128xf32> -> vector<2x128xf32>
      %124 = arith.addf %118, %123 : vector<2x128xf32>
      %c0_116 = arith.constant 0 : index
      %c2_117 = arith.constant 2 : index
      %c2_118 = arith.constant 2 : index
      %c0_119 = arith.constant 0 : index
      %125 = vector.load %arg5[%c0_116, %c2_117, %c2_118, %c0_119] : memref<2x4x8x8xf32, #tpu.memory_space<vmem>>, vector<2x1x1x8xf32>
      %126 = vector.shape_cast %125 : vector<2x1x1x8xf32> to vector<2x8xf32>
      %127 = arith.truncf %126 : vector<2x8xf32> to vector<2x8xbf16>
      %c144 = arith.constant 144 : index
      %c0_120 = arith.constant 0 : index
      %128 = vector.load %arg3[%c144, %c0_120] : memref<256x128xbf16, #tpu.memory_space<vmem>>, vector<8x128xbf16>
      %cst_121 = arith.constant dense<0.000000e+00> : vector<2x128xf32>
      %129 = tpu.matmul %127, %128, %cst_121 {dimension_numbers = #tpu.dot_dimension_numbers<[1], [0], [0], [1], [0, 0, 1, 1], [], []>} : vector<2x8xbf16>, vector<8x128xbf16>, vector<2x128xf32> -> vector<2x128xf32>
      %130 = arith.addf %124, %129 : vector<2x128xf32>
      %c0_122 = arith.constant 0 : index
      %c2_123 = arith.constant 2 : index
      %c3_124 = arith.constant 3 : index
      %c0_125 = arith.constant 0 : index
      %131 = vector.load %arg5[%c0_122, %c2_123, %c3_124, %c0_125] : memref<2x4x8x8xf32, #tpu.memory_space<vmem>>, vector<2x1x1x8xf32>
      %132 = vector.shape_cast %131 : vector<2x1x1x8xf32> to vector<2x8xf32>
      %133 = arith.truncf %132 : vector<2x8xf32> to vector<2x8xbf16>
      %c152 = arith.constant 152 : index
      %c0_126 = arith.constant 0 : index
      %134 = vector.load %arg3[%c152, %c0_126] : memref<256x128xbf16, #tpu.memory_space<vmem>>, vector<8x128xbf16>
      %cst_127 = arith.constant dense<0.000000e+00> : vector<2x128xf32>
      %135 = tpu.matmul %133, %134, %cst_127 {dimension_numbers = #tpu.dot_dimension_numbers<[1], [0], [0], [1], [0, 0, 1, 1], [], []>} : vector<2x8xbf16>, vector<8x128xbf16>, vector<2x128xf32> -> vector<2x128xf32>
      %136 = arith.addf %130, %135 : vector<2x128xf32>
      %c0_128 = arith.constant 0 : index
      %c2_129 = arith.constant 2 : index
      %c4_130 = arith.constant 4 : index
      %c0_131 = arith.constant 0 : index
      %137 = vector.load %arg5[%c0_128, %c2_129, %c4_130, %c0_131] : memref<2x4x8x8xf32, #tpu.memory_space<vmem>>, vector<2x1x1x8xf32>
      %138 = vector.shape_cast %137 : vector<2x1x1x8xf32> to vector<2x8xf32>
      %139 = arith.truncf %138 : vector<2x8xf32> to vector<2x8xbf16>
      %c160 = arith.constant 160 : index
      %c0_132 = arith.constant 0 : index
      %140 = vector.load %arg3[%c160, %c0_132] : memref<256x128xbf16, #tpu.memory_space<vmem>>, vector<8x128xbf16>
      %cst_133 = arith.constant dense<0.000000e+00> : vector<2x128xf32>
      %141 = tpu.matmul %139, %140, %cst_133 {dimension_numbers = #tpu.dot_dimension_numbers<[1], [0], [0], [1], [0, 0, 1, 1], [], []>} : vector<2x8xbf16>, vector<8x128xbf16>, vector<2x128xf32> -> vector<2x128xf32>
      %142 = arith.addf %136, %141 : vector<2x128xf32>
      %c0_134 = arith.constant 0 : index
      %c2_135 = arith.constant 2 : index
      %c5_136 = arith.constant 5 : index
      %c0_137 = arith.constant 0 : index
      %143 = vector.load %arg5[%c0_134, %c2_135, %c5_136, %c0_137] : memref<2x4x8x8xf32, #tpu.memory_space<vmem>>, vector<2x1x1x8xf32>
      %144 = vector.shape_cast %143 : vector<2x1x1x8xf32> to vector<2x8xf32>
      %145 = arith.truncf %144 : vector<2x8xf32> to vector<2x8xbf16>
      %c168 = arith.constant 168 : index
      %c0_138 = arith.constant 0 : index
      %146 = vector.load %arg3[%c168, %c0_138] : memref<256x128xbf16, #tpu.memory_space<vmem>>, vector<8x128xbf16>
      %cst_139 = arith.constant dense<0.000000e+00> : vector<2x128xf32>
      %147 = tpu.matmul %145, %146, %cst_139 {dimension_numbers = #tpu.dot_dimension_numbers<[1], [0], [0], [1], [0, 0, 1, 1], [], []>} : vector<2x8xbf16>, vector<8x128xbf16>, vector<2x128xf32> -> vector<2x128xf32>
      %148 = arith.addf %142, %147 : vector<2x128xf32>
      %c0_140 = arith.constant 0 : index
      %c2_141 = arith.constant 2 : index
      %c6_142 = arith.constant 6 : index
      %c0_143 = arith.constant 0 : index
      %149 = vector.load %arg5[%c0_140, %c2_141, %c6_142, %c0_143] : memref<2x4x8x8xf32, #tpu.memory_space<vmem>>, vector<2x1x1x8xf32>
      %150 = vector.shape_cast %149 : vector<2x1x1x8xf32> to vector<2x8xf32>
      %151 = arith.truncf %150 : vector<2x8xf32> to vector<2x8xbf16>
      %c176 = arith.constant 176 : index
      %c0_144 = arith.constant 0 : index
      %152 = vector.load %arg3[%c176, %c0_144] : memref<256x128xbf16, #tpu.memory_space<vmem>>, vector<8x128xbf16>
      %cst_145 = arith.constant dense<0.000000e+00> : vector<2x128xf32>
      %153 = tpu.matmul %151, %152, %cst_145 {dimension_numbers = #tpu.dot_dimension_numbers<[1], [0], [0], [1], [0, 0, 1, 1], [], []>} : vector<2x8xbf16>, vector<8x128xbf16>, vector<2x128xf32> -> vector<2x128xf32>
      %154 = arith.addf %148, %153 : vector<2x128xf32>
      %c0_146 = arith.constant 0 : index
      %c2_147 = arith.constant 2 : index
      %c7_148 = arith.constant 7 : index
      %c0_149 = arith.constant 0 : index
      %155 = vector.load %arg5[%c0_146, %c2_147, %c7_148, %c0_149] : memref<2x4x8x8xf32, #tpu.memory_space<vmem>>, vector<2x1x1x8xf32>
      %156 = vector.shape_cast %155 : vector<2x1x1x8xf32> to vector<2x8xf32>
      %157 = arith.truncf %156 : vector<2x8xf32> to vector<2x8xbf16>
      %c184 = arith.constant 184 : index
      %c0_150 = arith.constant 0 : index
      %158 = vector.load %arg3[%c184, %c0_150] : memref<256x128xbf16, #tpu.memory_space<vmem>>, vector<8x128xbf16>
      %cst_151 = arith.constant dense<0.000000e+00> : vector<2x128xf32>
      %159 = tpu.matmul %157, %158, %cst_151 {dimension_numbers = #tpu.dot_dimension_numbers<[1], [0], [0], [1], [0, 0, 1, 1], [], []>} : vector<2x8xbf16>, vector<8x128xbf16>, vector<2x128xf32> -> vector<2x128xf32>
      %160 = arith.addf %154, %159 : vector<2x128xf32>
      %c0_152 = arith.constant 0 : index
      %c3_153 = arith.constant 3 : index
      %c0_154 = arith.constant 0 : index
      %c0_155 = arith.constant 0 : index
      %161 = vector.load %arg5[%c0_152, %c3_153, %c0_154, %c0_155] : memref<2x4x8x8xf32, #tpu.memory_space<vmem>>, vector<2x1x1x8xf32>
      %162 = vector.shape_cast %161 : vector<2x1x1x8xf32> to vector<2x8xf32>
      %163 = arith.truncf %162 : vector<2x8xf32> to vector<2x8xbf16>
      %c192 = arith.constant 192 : index
      %c0_156 = arith.constant 0 : index
      %164 = vector.load %arg3[%c192, %c0_156] : memref<256x128xbf16, #tpu.memory_space<vmem>>, vector<8x128xbf16>
      %cst_157 = arith.constant dense<0.000000e+00> : vector<2x128xf32>
      %165 = tpu.matmul %163, %164, %cst_157 {dimension_numbers = #tpu.dot_dimension_numbers<[1], [0], [0], [1], [0, 0, 1, 1], [], []>} : vector<2x8xbf16>, vector<8x128xbf16>, vector<2x128xf32> -> vector<2x128xf32>
      %166 = arith.addf %160, %165 : vector<2x128xf32>
      %c0_158 = arith.constant 0 : index
      %c3_159 = arith.constant 3 : index
      %c1_160 = arith.constant 1 : index
      %c0_161 = arith.constant 0 : index
      %167 = vector.load %arg5[%c0_158, %c3_159, %c1_160, %c0_161] : memref<2x4x8x8xf32, #tpu.memory_space<vmem>>, vector<2x1x1x8xf32>
      %168 = vector.shape_cast %167 : vector<2x1x1x8xf32> to vector<2x8xf32>
      %169 = arith.truncf %168 : vector<2x8xf32> to vector<2x8xbf16>
      %c200 = arith.constant 200 : index
      %c0_162 = arith.constant 0 : index
      %170 = vector.load %arg3[%c200, %c0_162] : memref<256x128xbf16, #tpu.memory_space<vmem>>, vector<8x128xbf16>
      %cst_163 = arith.constant dense<0.000000e+00> : vector<2x128xf32>
      %171 = tpu.matmul %169, %170, %cst_163 {dimension_numbers = #tpu.dot_dimension_numbers<[1], [0], [0], [1], [0, 0, 1, 1], [], []>} : vector<2x8xbf16>, vector<8x128xbf16>, vector<2x128xf32> -> vector<2x128xf32>
      %172 = arith.addf %166, %171 : vector<2x128xf32>
      %c0_164 = arith.constant 0 : index
      %c3_165 = arith.constant 3 : index
      %c2_166 = arith.constant 2 : index
      %c0_167 = arith.constant 0 : index
      %173 = vector.load %arg5[%c0_164, %c3_165, %c2_166, %c0_167] : memref<2x4x8x8xf32, #tpu.memory_space<vmem>>, vector<2x1x1x8xf32>
      %174 = vector.shape_cast %173 : vector<2x1x1x8xf32> to vector<2x8xf32>
      %175 = arith.truncf %174 : vector<2x8xf32> to vector<2x8xbf16>
      %c208 = arith.constant 208 : index
      %c0_168 = arith.constant 0 : index
      %176 = vector.load %arg3[%c208, %c0_168] : memref<256x128xbf16, #tpu.memory_space<vmem>>, vector<8x128xbf16>
      %cst_169 = arith.constant dense<0.000000e+00> : vector<2x128xf32>
      %177 = tpu.matmul %175, %176, %cst_169 {dimension_numbers = #tpu.dot_dimension_numbers<[1], [0], [0], [1], [0, 0, 1, 1], [], []>} : vector<2x8xbf16>, vector<8x128xbf16>, vector<2x128xf32> -> vector<2x128xf32>
      %178 = arith.addf %172, %177 : vector<2x128xf32>
      %c0_170 = arith.constant 0 : index
      %c3_171 = arith.constant 3 : index
      %c3_172 = arith.constant 3 : index
      %c0_173 = arith.constant 0 : index
      %179 = vector.load %arg5[%c0_170, %c3_171, %c3_172, %c0_173] : memref<2x4x8x8xf32, #tpu.memory_space<vmem>>, vector<2x1x1x8xf32>
      %180 = vector.shape_cast %179 : vector<2x1x1x8xf32> to vector<2x8xf32>
      %181 = arith.truncf %180 : vector<2x8xf32> to vector<2x8xbf16>
      %c216 = arith.constant 216 : index
      %c0_174 = arith.constant 0 : index
      %182 = vector.load %arg3[%c216, %c0_174] : memref<256x128xbf16, #tpu.memory_space<vmem>>, vector<8x128xbf16>
      %cst_175 = arith.constant dense<0.000000e+00> : vector<2x128xf32>
      %183 = tpu.matmul %181, %182, %cst_175 {dimension_numbers = #tpu.dot_dimension_numbers<[1], [0], [0], [1], [0, 0, 1, 1], [], []>} : vector<2x8xbf16>, vector<8x128xbf16>, vector<2x128xf32> -> vector<2x128xf32>
      %184 = arith.addf %178, %183 : vector<2x128xf32>
      %c0_176 = arith.constant 0 : index
      %c3_177 = arith.constant 3 : index
      %c4_178 = arith.constant 4 : index
      %c0_179 = arith.constant 0 : index
      %185 = vector.load %arg5[%c0_176, %c3_177, %c4_178, %c0_179] : memref<2x4x8x8xf32, #tpu.memory_space<vmem>>, vector<2x1x1x8xf32>
      %186 = vector.shape_cast %185 : vector<2x1x1x8xf32> to vector<2x8xf32>
      %187 = arith.truncf %186 : vector<2x8xf32> to vector<2x8xbf16>
      %c224 = arith.constant 224 : index
      %c0_180 = arith.constant 0 : index
      %188 = vector.load %arg3[%c224, %c0_180] : memref<256x128xbf16, #tpu.memory_space<vmem>>, vector<8x128xbf16>
      %cst_181 = arith.constant dense<0.000000e+00> : vector<2x128xf32>
      %189 = tpu.matmul %187, %188, %cst_181 {dimension_numbers = #tpu.dot_dimension_numbers<[1], [0], [0], [1], [0, 0, 1, 1], [], []>} : vector<2x8xbf16>, vector<8x128xbf16>, vector<2x128xf32> -> vector<2x128xf32>
      %190 = arith.addf %184, %189 : vector<2x128xf32>
      %c0_182 = arith.constant 0 : index
      %c3_183 = arith.constant 3 : index
      %c5_184 = arith.constant 5 : index
      %c0_185 = arith.constant 0 : index
      %191 = vector.load %arg5[%c0_182, %c3_183, %c5_184, %c0_185] : memref<2x4x8x8xf32, #tpu.memory_space<vmem>>, vector<2x1x1x8xf32>
      %192 = vector.shape_cast %191 : vector<2x1x1x8xf32> to vector<2x8xf32>
      %193 = arith.truncf %192 : vector<2x8xf32> to vector<2x8xbf16>
      %c232 = arith.constant 232 : index
      %c0_186 = arith.constant 0 : index
      %194 = vector.load %arg3[%c232, %c0_186] : memref<256x128xbf16, #tpu.memory_space<vmem>>, vector<8x128xbf16>
      %cst_187 = arith.constant dense<0.000000e+00> : vector<2x128xf32>
      %195 = tpu.matmul %193, %194, %cst_187 {dimension_numbers = #tpu.dot_dimension_numbers<[1], [0], [0], [1], [0, 0, 1, 1], [], []>} : vector<2x8xbf16>, vector<8x128xbf16>, vector<2x128xf32> -> vector<2x128xf32>
      %196 = arith.addf %190, %195 : vector<2x128xf32>
      %c0_188 = arith.constant 0 : index
      %c3_189 = arith.constant 3 : index
      %c6_190 = arith.constant 6 : index
      %c0_191 = arith.constant 0 : index
      %197 = vector.load %arg5[%c0_188, %c3_189, %c6_190, %c0_191] : memref<2x4x8x8xf32, #tpu.memory_space<vmem>>, vector<2x1x1x8xf32>
      %198 = vector.shape_cast %197 : vector<2x1x1x8xf32> to vector<2x8xf32>
      %199 = arith.truncf %198 : vector<2x8xf32> to vector<2x8xbf16>
      %c240 = arith.constant 240 : index
      %c0_192 = arith.constant 0 : index
      %200 = vector.load %arg3[%c240, %c0_192] : memref<256x128xbf16, #tpu.memory_space<vmem>>, vector<8x128xbf16>
      %cst_193 = arith.constant dense<0.000000e+00> : vector<2x128xf32>
      %201 = tpu.matmul %199, %200, %cst_193 {dimension_numbers = #tpu.dot_dimension_numbers<[1], [0], [0], [1], [0, 0, 1, 1], [], []>} : vector<2x8xbf16>, vector<8x128xbf16>, vector<2x128xf32> -> vector<2x128xf32>
      %202 = arith.addf %196, %201 : vector<2x128xf32>
      %c0_194 = arith.constant 0 : index
      %c3_195 = arith.constant 3 : index
      %c7_196 = arith.constant 7 : index
      %c0_197 = arith.constant 0 : index
      %203 = vector.load %arg5[%c0_194, %c3_195, %c7_196, %c0_197] : memref<2x4x8x8xf32, #tpu.memory_space<vmem>>, vector<2x1x1x8xf32>
      %204 = vector.shape_cast %203 : vector<2x1x1x8xf32> to vector<2x8xf32>
      %205 = arith.truncf %204 : vector<2x8xf32> to vector<2x8xbf16>
      %c248 = arith.constant 248 : index
      %c0_198 = arith.constant 0 : index
      %206 = vector.load %arg3[%c248, %c0_198] : memref<256x128xbf16, #tpu.memory_space<vmem>>, vector<8x128xbf16>
      %cst_199 = arith.constant dense<0.000000e+00> : vector<2x128xf32>
      %207 = tpu.matmul %205, %206, %cst_199 {dimension_numbers = #tpu.dot_dimension_numbers<[1], [0], [0], [1], [0, 0, 1, 1], [], []>} : vector<2x8xbf16>, vector<8x128xbf16>, vector<2x128xf32> -> vector<2x128xf32>
      %208 = arith.addf %202, %207 : vector<2x128xf32>
      %209 = arith.truncf %208 : vector<2x128xf32> to vector<2x128xbf16>
      %c0_200 = arith.constant 0 : index
      %c0_201 = arith.constant 0 : index
      %210 = vector.load %arg4[%c0_200, %c0_201] : memref<2x128xbf16, #tpu.memory_space<vmem>>, vector<2x128xbf16>
      tpu.vector_store %arg4[%c0_200, %c0_201], %209 {strides = array<i32>} : memref<2x128xbf16, #tpu.memory_space<vmem>>, vector<2x128xbf16>,
    } else {
    }
    return
  }
  func.func @transform_0(%arg0: i32, %arg1: i32) -> (i32, i32, i32, i32) {
    %c0_i32 = arith.constant 0 : i32
    %c0_i32_0 = arith.constant 0 : i32
    %c0_i32_1 = arith.constant 0 : i32
    return %arg0, %c0_i32, %arg1, %c0_i32_0 : i32, i32, i32, i32
  }
  func.func @transform_1(%arg0: i32, %arg1: i32) -> (i32, i32) {
    %c0_i32 = arith.constant 0 : i32
    %c0_i32_0 = arith.constant 0 : i32
    %c0_i32_1 = arith.constant 0 : i32
    return %c0_i32, %c0_i32_0 : i32, i32
  }
  func.func @transform_2(%arg0: i32, %arg1: i32) -> (i32, i32) {
    %c0_i32 = arith.constant 0 : i32
    %c0_i32_0 = arith.constant 0 : i32
    return %arg0, %c0_i32 : i32, i32
  }
}

</mosaic_0001>

<bundles_post_ra>
// kernel: tpu_custom_call.1
= control target key start
LH: loop header
LB: loop body
LE: loop exit
PB: predicated region body
PF: predicated region fallthrough
CT: control target
= control target key end

     0   :  { %7 = vsyncpa [#allocation4], 0  ;;  %s2757_s0 = inlined_call_operand.hbm [shape: f32[2,4,16,16], index: 0, kind: input, shape index: {}]   ;;  %s2758_s1 = inlined_call_operand.hbm [shape: bf16[256,128], index: 1, kind: input, shape index: {}]   ;;  %s2759_s2 = inlined_call_operand.hbm [shape: bf16[2,128], index: 2, kind: output, shape index: {}]  }
   0x1   :  { %8 = vsyncpa [#allocation7], 0 }
   0x2   :  { %9 = vsyncpa [#allocation5], 0  ;;  %s2459_s9 = smov [#allocation3]  }
   0x3   :  { %s15_s10 = sshll.u32 %s2459_s9, 4  ;;  %s16_s10 = int_to_ptr.vmem [resolvable:$true] %s15_s10 }
   0x4   :  { %s2401_s11 = scalar_lea.vmem %s16_s10, 2048  ;;  %p2406_p1 = scmp.lt.s32.totalorder %s16_s10, %s16_s10 }
   0x5   :  { %p2402_p0 = scmp.ne.s32.totalorder %s16_s10, %s2401_s11  ;;  %p2407_p2 = scmp.lt.s32.totalorder %s2401_s11, %s2401_s11 }
   0x7   :  { %p2408_p3 = por %p2407_p2, %p2406_p1 }
   0x9   :  { %p2409_p4 = pnand %p2408_p3, %p2402_p0 }
   0xb   :  { %2412 = shalt.err (!%p2409_p4)
}
   0xc   :  { %s2460_s12 = smov 128   ;;  %s2461_s13 = smov 8  }
   0xd   :  { %21 = dma.hbm_to_vmem [thread:$0]  %s2757_s0, 2048, %s16_s10, [#allocation4], %s2460_s12, %s2460_s12, %s2461_s13  }
   0xe   :  { %s2462_s16 = smov [#allocation6]  }
   0xf   :  { %s27_s17 = sshll.u32 %s2462_s16, 4  ;;  %s28_s17 = int_to_ptr.vmem [resolvable:$true] %s27_s17 }
  0x10   :  { %s2421_s18 = scalar_lea.vmem %s28_s17, 2048  ;;  %p2426_p6 = scmp.lt.s32.totalorder %s28_s17, %s28_s17 }
  0x11   :  { %p2422_p5 = scmp.ne.s32.totalorder %s28_s17, %s2421_s18  ;;  %p2427_p7 = scmp.lt.s32.totalorder %s2421_s18, %s2421_s18 }
  0x13   :  { %p2428_p8 = por %p2427_p7, %p2426_p6 }
  0x15   :  { %p2429_p9 = pnand %p2428_p8, %p2422_p5 }
  0x17   :  { %2432 = shalt.err (!%p2429_p9)
}
  0x18   :  { %s2463_s19 = smov 64   ;;  %s2464_s20 = smov 4  }
  0x19   :  { %33 = dma.hbm_to_vmem [thread:$0]  %s2758_s1, 2048, %s28_s17, [#allocation7], %s2463_s19, %s2463_s19, %s2464_s20  }
  0x1a   :  { %2453 = dma.done.wait [#allocation4], 2048  }
  0x1b   :  { %2454 = vsyncadd [#allocation4], 4294965248 }
  0x1c   :  { %2455 = dma.done.wait [#allocation7], 2048  }
  0x1d   :  { %2456 = vsyncadd [#allocation7], 4294965248  ;;  %vm45_vm0 = vcmask 64512   ;;  %v2465_v0 = vmov 0.0   ;;  %vm2466_vm1 = vmmov 0   ;;  %v62_v1 = vld [vmem:[#allocation3 + $0x40] sm:$0xff] }
  0x1e   :  { %50 = vst.msk [vmem:[#allocation2 + $0x20] sm:$0xff] %vm45_vm0, %v2465_v0  ;;  %46 = vst.msk [vmem:[#allocation2] sm:$0xff] %vm45_vm0, %v2465_v0  ;;  %2191 = vmatprep.subr.bf16.mxu0 %v2465_v0  ;;  %2197 = vmatprep.subr.bf16.mxu1 %v2465_v0  ;;  %v54_v2 = vld [vmem:[#allocation3] sm:$0xff]  ;;  %s2467_s0 = smov 120   ;;  %v63_v3 = vld [vmem:[#allocation3 + $0x48] sm:$0xff]  ;;  %vm207_vm2 = vcmask 1043456  }
  0x1f   :  { %47 = vst.msk [vmem:[#allocation2 + $0x8] sm:$0xff] %vm45_vm0, %v2465_v0  ;;  %48 = vst.msk [vmem:[#allocation2 + $0x10] sm:$0xff] %vm45_vm0, %v2465_v0  ;;  %2193 = vmatprep.mubr.msk.bf16.mxu0 %vm2466_vm1, %v2465_v0  ;;  %2199 = vmatprep.mubr.msk.bf16.mxu1 %vm2466_vm1, %v2465_v0  ;;  %v55_v4 = vld [vmem:[#allocation3 + $0x8] sm:$0xff]  ;;  %v64_v5 = vld [vmem:[#allocation3 + $0x50] sm:$0xff]  ;;  %vm201_vm3 = vcmask 1041409   ;;  %s2468_s1 = smov [#allocation8]  }
  0x20   :  { %49 = vst.msk [vmem:[#allocation2 + $0x18] sm:$0xff] %vm45_vm0, %v2465_v0  ;;  %51 = vst.msk [vmem:[#allocation2 + $0x28] sm:$0xff] %vm45_vm0, %v2465_v0  ;;  %102 = vrot.lane.b32.xlu0 %v62_v1, %s2467_s0  ;;  %86 = vrot.lane.b32.xlu1 %v54_v2, %s2467_s0  ;;  %v65_v6 = vld [vmem:[#allocation3 + $0x58] sm:$0xff]  ;;  %v195_v7 = vld [vmem:[#allocation6 + $0x4] sm:$0xf]  ;;  %s2085_s23 = sshll.u32 %s2468_s1, 4  ;;  %s2086_s23 = int_to_ptr.vmem [resolvable:$true] %s2085_s23 }
  0x21   :  { %52 = vst.msk [vmem:[#allocation2 + $0x30] sm:$0xff] %vm45_vm0, %v2465_v0  ;;  %53 = vst.msk [vmem:[#allocation2 + $0x38] sm:$0xff] %vm45_vm0, %v2465_v0  ;;  %v190_v8 = vld [vmem:[#allocation6] sm:$0xf]  ;;  %v209_v9 = vsel %vm207_vm2, %v195_v7, 0  ;;  %v56_v11 = vld [vmem:[#allocation3 + $0x10] sm:$0xff]  ;;  %p2438_p11 = scmp.lt.s32.totalorder %s2086_s23, %s2086_s23 }
  0x22   :  { %v262_v10 = vsel %vm207_vm2, %v190_v8, 0  ;;  %2192 = vmatpush3.bf16.msra.mxu0 %v209_v9  ;;  %v57_v12 = vld [vmem:[#allocation3 + $0x18] sm:$0xff]  ;;  %v2524_v13 = vld [vmem:[#allocation3 + $0x60] sm:$0xff]  ;;  %v2526_v14 = vld [vmem:[#allocation3 + $0x68] sm:$0xff]  ;;  %s2433_s24 = scalar_lea.vmem %s2086_s23, 16  ;;  %s2437_s25 = scalar_lea.vmem %s2086_s23, 32 }
  0x23   :  { %2198 = vmatpush3.bf16.msra.mxu1 %v262_v10  ;;  %2203 = vmatprep.subr.bf16.mxu0 %v2465_v0  ;;  %v2532_v15 = vld [vmem:[#allocation3 + $0x20] sm:$0xff]  ;;  %v2534_v16 = vld [vmem:[#allocation3 + $0x28] sm:$0xff]  ;;  %v2540_v17 = vld [vmem:[#allocation3 + $0x70] sm:$0xff]  ;;  %p2434_p10 = scmp.ne.s32.totalorder %s2086_s23, %s2433_s24  ;;  %p2439_p12 = scmp.lt.s32.totalorder %s2437_s25, %s2433_s24 }
  0x24   :  { %104 = vrot.lane.b32.xlu0 %v63_v3, %s2467_s0  ;;  %88 = vrot.lane.b32.xlu1 %v55_v4, %s2467_s0  ;;  %v2542_v18 = vld [vmem:[#allocation3 + $0x78] sm:$0xff]  ;;  %v2548_v19 = vld [vmem:[#allocation3 + $0x30] sm:$0xff]  ;;  %v308_v62 = vld [vmem:[#allocation6 + $0x8] sm:$0xf] }
  0x25   :  { %2209 = vmatprep.subr.bf16.mxu1 %v2465_v0  ;;  %v2550_v20 = vld [vmem:[#allocation3 + $0x38] sm:$0xff]  ;;  %v162_v29 = vld [vmem:[#allocation2 + $0x20] sm:$0xff]  ;;  %v367_v8 = vld [vmem:[#allocation6 + $0xc] sm:$0xf]  ;;  %p2440_p13 = por %p2439_p12, %p2438_p11 }
  0x26   :  { %v158_v30 = vld [vmem:[#allocation2] sm:$0xff]  ;;  %v159_v46 = vld [vmem:[#allocation2 + $0x8] sm:$0xff] }
  0x27   :  { %v163_v39 = vld [vmem:[#allocation2 + $0x28] sm:$0xff]  ;;  %p2441_p0 = pnand %p2440_p13, %p2434_p10 }
  0x28   :  { %106 = vrot.lane.b32.xlu0 %v64_v5, %s2467_s0  ;;  %108 = vrot.lane.b32.xlu1 %v65_v6, %s2467_s0 }
  0x2c   :  { %90 = vrot.lane.b32.xlu0 %v56_v11, %s2467_s0  ;;  %92 = vrot.lane.b32.xlu1 %v57_v12, %s2467_s0 }
  0x30   :  { %110 = vrot.lane.b32.xlu0 %v2524_v13, %s2467_s0  ;;  %112 = vrot.lane.b32.xlu1 %v2526_v14, %s2467_s0 }
  0x34   :  { %94 = vrot.lane.b32.xlu0 %v2532_v15, %s2467_s0  ;;  %96 = vrot.lane.b32.xlu1 %v2534_v16, %s2467_s0 }
  0x38   :  { %114 = vrot.lane.b32.xlu0 %v2540_v17, %s2467_s0  ;;  %116 = vrot.lane.b32.xlu1 %v2542_v18, %s2467_s0 }
  0x3c   :  { %98 = vrot.lane.b32.xlu0 %v2548_v19, %s2467_s0  ;;  %100 = vrot.lane.b32.xlu1 %v2550_v20, %s2467_s0 }
  0x92   :  { %v103_v21 = vpop.permute.xlu0 %102  ;;  %v87_v22 = vpop.permute.xlu1 %86 }
  0x93   :  { %v142_v25 = vadd.f32 %v103_v21, %v62_v1  ;;  %v134_v26 = vadd.f32 %v87_v22, %v54_v2  ;;  %v320_v21 = vsel %vm207_vm2, %v308_v62, 0 }
  0x96   :  { %v105_v23 = vpop.permute.xlu0 %104  ;;  %v89_v24 = vpop.permute.xlu1 %88 }
  0x97   :  { %v143_v27 = vadd.f32 %v105_v23, %v63_v3  ;;  %v135_v28 = vadd.f32 %v89_v24, %v55_v4 }
  0x99   :  { %v154_v31 = vadd.f32 %v143_v27, %v142_v25  ;;  %v150_v32 = vadd.f32 %v135_v28, %v134_v26 }
  0x9a   :  { %v107_v33 = vpop.permute.xlu0 %106  ;;  %v109_v34 = vpop.permute.xlu1 %108 }
  0x9b   :  { %v170_v35 = vadd.f32 %v162_v29, %v154_v31  ;;  %v166_v36 = vadd.f32 %v158_v30, %v150_v32  ;;  %v144_v37 = vadd.f32 %v107_v33, %v64_v5  ;;  %v145_v38 = vadd.f32 %v109_v34, %v65_v6 }
  0x9c   :  { %v379_v31 = vsel %vm207_vm2, %v367_v8, 0  ;;  %v603_v8 = vld [vmem:[#allocation6 + $0x1c] sm:$0xf] }
  0x9d   :  { %179 = vst.msk [vmem:[#allocation2 + $0x20] sm:$0xff] %vm45_vm0, %v170_v35  ;;  %175 = vst.msk [vmem:[#allocation2] sm:$0xff] %vm45_vm0, %v166_v36  ;;  %v155_v40 = vadd.f32 %v145_v38, %v144_v37  ;;  %v426_v37 = vld [vmem:[#allocation6 + $0x10] sm:$0xf] }
  0x9e   :  { %v91_v41 = vpop.permute.xlu0 %90  ;;  %v93_v42 = vpop.permute.xlu1 %92 }
  0x9f   :  { %v171_v43 = vadd.f32 %v163_v39, %v155_v40  ;;  %v136_v44 = vadd.f32 %v91_v41, %v56_v11  ;;  %v137_v45 = vadd.f32 %v93_v42, %v57_v12  ;;  %v485_v40 = vld [vmem:[#allocation6 + $0x14] sm:$0xf] }
  0xa1   :  { %180 = vst.msk [vmem:[#allocation2 + $0x28] sm:$0xff] %vm45_vm0, %v171_v43  ;;  %v151_v47 = vadd.f32 %v137_v45, %v136_v44  ;;  %v164_v43 = vld [vmem:[#allocation2 + $0x30] sm:$0xff] }
  0xa2   :  { %v111_v11 = vpop.permute.xlu0 %110  ;;  %v113_v25 = vpop.permute.xlu1 %112 }
  0xa3   :  { %v167_v48 = vadd.f32 %v159_v46, %v151_v47  ;;  %v146_v24 = vadd.f32 %v111_v11, %v2524_v13  ;;  %v147_v29 = vadd.f32 %v113_v25, %v2526_v14 }
  0xa4   :  { %v191_v49 = vld [vmem:[#allocation2 + $0x1] sm:$0x1]  ;;  %v186_v51 = vld [vmem:[#allocation2] sm:$0x1]  ;;  %v305_v55 = vld [vmem:[#allocation2 + $0x22] sm:$0x1] }
  0xa5   :  { %v192_v50 = vld [vmem:[#allocation2 + $0x21] sm:$0x1]  ;;  %v193_v52 = vpack.c.bf16 %v191_v49, %v191_v49  ;;  %v187_v54 = vld [vmem:[#allocation2 + $0x20] sm:$0x1]  ;;  %176 = vst.msk [vmem:[#allocation2 + $0x8] sm:$0xff] %vm45_vm0, %v167_v48  ;;  %v188_v56 = vpack.c.bf16 %v186_v51, %v186_v51  ;;  %v307_v58 = vpack.c.bf16 %v305_v55, %v305_v55  ;;  %v156_v38 = vadd.f32 %v147_v29, %v146_v24 }
  0xa6   :  { %v194_v53 = vpack.c.bf16 %v192_v50, %v192_v50  ;;  %v189_v57 = vpack.c.bf16 %v187_v54, %v187_v54  ;;  %v364_v59 = vld [vmem:[#allocation2 + $0x23] sm:$0x1]  ;;  %v304_v63 = vld [vmem:[#allocation2 + $0x2] sm:$0x1]  ;;  %v423_v10 = vld [vmem:[#allocation2 + $0x24] sm:$0x1]  ;;  %v95_v47 = vpop.permute.xlu0 %94  ;;  %v97_v51 = vpop.permute.xlu1 %96 }
  0xa7   :  { %v366_v1 = vpack.c.bf16 %v364_v59, %v364_v59  ;;  %v198_v2 = vunpack.c.l.b16 %v193_v52  ;;  %v312_v4 = vunpack.c.l.b16 %v307_v58  ;;  %v363_v5 = vld [vmem:[#allocation2 + $0x3] sm:$0x1]  ;;  %v253_v6 = vunpack.c.l.b16 %v188_v56  ;;  %v482_v23 = vld [vmem:[#allocation2 + $0x25] sm:$0x1]  ;;  %v422_v14 = vld [vmem:[#allocation2 + $0x4] sm:$0x1] }
  0xa8   :  { %v199_v60 = vunpack.c.l.b16 %v194_v53  ;;  %v254_v61 = vunpack.c.l.b16 %v189_v57  ;;  %v306_v22 = vpack.c.bf16 %v304_v63, %v304_v63  ;;  %v365_v28 = vpack.c.bf16 %v363_v5, %v363_v5  ;;  %v481_v42 = vld [vmem:[#allocation2 + $0x5] sm:$0x1]  ;;  %v541_v46 = vld [vmem:[#allocation2 + $0x26] sm:$0x1]  ;;  %v600_v50 = vld [vmem:[#allocation2 + $0x27] sm:$0x1] }
  0xa9   :  { %v371_v9 = vunpack.c.l.b16 %v366_v1  ;;  %v313_v32 = vrot.slane %v312_v4, 7  ;;  %v425_v33 = vpack.c.bf16 %v423_v10, %v423_v10  ;;  %v484_v35 = vpack.c.bf16 %v482_v23, %v482_v23  ;;  %v544_v4 = vld [vmem:[#allocation6 + $0x18] sm:$0xf]  ;;  %v599_v5 = vld [vmem:[#allocation2 + $0x7] sm:$0x1] }
  0xaa   :  { %v200_v3 = vrot.slane %v199_v60, 7  ;;  %v255_v7 = vrot.slane %v254_v61, 7  ;;  %v311_v13 = vunpack.c.l.b16 %v306_v22  ;;  %v370_v36 = vunpack.c.l.b16 %v365_v28  ;;  %v660_v10 = vld [vmem:[#allocation2 + $0x28] sm:$0x1]  ;;  %v115_v11 = vpop.permute.xlu0 %114  ;;  %v117_v23 = vpop.permute.xlu1 %116 }
  0xab   :  { %v372_v34 = vrot.slane %v371_v9, 7  ;;  %v430_v41 = vunpack.c.l.b16 %v425_v33  ;;  %v489_v45 = vunpack.c.l.b16 %v484_v35  ;;  %v438_v48 = vsel %vm207_vm2, %v426_v37, 0 }
  0xac   :  { %v202_v12 = vsel %vm201_vm3, %v200_v3, %v198_v2  ;;  %v256_v27 = vsel %vm201_vm3, %v255_v7, %v253_v6  ;;  %v314_v39 = vsel %vm201_vm3, %v313_v32, %v311_v13  ;;  %v424_v49 = vpack.c.bf16 %v422_v14, %v422_v14  ;;  %v540_v2 = vld [vmem:[#allocation2 + $0x6] sm:$0x1]  ;;  %v160_v3 = vld [vmem:[#allocation2 + $0x10] sm:$0xff]  ;;  %v718_v35 = vld [vmem:[#allocation2 + $0x9] sm:$0x1] }
  0xad   :  { %v203_v26 = vpack.c.b16 %v202_v12, %v202_v12  ;;  %v257_v30 = vpack.c.b16 %v256_v27, %v256_v27  ;;  %v373_v44 = vsel %vm201_vm3, %v372_v34, %v370_v36  ;;  %v315_v52 = vpack.c.b16 %v314_v39, %v314_v39  ;;  %v663_v36 = vld [vmem:[#allocation6 + $0x20] sm:$0xf]  ;;  %v722_v39 = vld [vmem:[#allocation6 + $0x24] sm:$0xf] }
  0xae   :  { %v497_v53 = vsel %vm207_vm2, %v485_v40, 0  ;;  %v483_v54 = vpack.c.bf16 %v481_v42, %v481_v42  ;;  %v172_v55 = vadd.f32 %v164_v43, %v156_v38  ;;  %v374_v56 = vpack.c.b16 %v373_v44, %v373_v44  ;;  %v99_v14 = vpop.permute.xlu0 %98 }
  0xaf   :  { %2194 = vmatmul.mubr.msk.bf16.vlgmr.msra.gmra.mxu0 %vm45_vm0, %v203_v26  ;;  %2200 = vmatmul.mubr.msk.bf16.vlgmr.msra.gmra.mxu1 %vm45_vm0, %v257_v30  ;;  %v431_v57 = vrot.slane %v430_v41, 7  ;;  %v543_v58 = vpack.c.bf16 %v541_v46, %v541_v46  ;;  %v138_v59 = vadd.f32 %v95_v47, %v2532_v15  ;;  %v490_v60 = vrot.slane %v489_v45, 7  ;;  %v659_v30 = vld [vmem:[#allocation2 + $0x8] sm:$0x1]  ;;  %v101_v41 = vpop.permute.xlu1 %100  ;;  %v778_v45 = vld [vmem:[#allocation2 + $0x2a] sm:$0x1] }
  0xb0   :  { %2204 = vmatpush3.bf16.msra.mxu0 %v320_v21  ;;  %2210 = vmatpush3.bf16.msra.mxu1 %v379_v31  ;;  %v602_v61 = vpack.c.bf16 %v600_v50, %v600_v50  ;;  %181 = vst.msk [vmem:[#allocation2 + $0x30] sm:$0xff] %vm45_vm0, %v172_v55  ;;  %v139_v62 = vadd.f32 %v97_v51, %v2534_v16  ;;  %v429_v63 = vunpack.c.l.b16 %v424_v49  ;;  %v488_v1 = vunpack.c.l.b16 %v483_v54  ;;  %v719_v21 = vld [vmem:[#allocation2 + $0x29] sm:$0x1]  ;;  %v165_v54 = vld [vmem:[#allocation2 + $0x38] sm:$0xff] }
  0xb1   :  { %2205 = vmatprep.mubr.msk.bf16.mxu0 %vm2466_vm1, %v2465_v0  ;;  %2211 = vmatprep.mubr.msk.bf16.mxu1 %vm2466_vm1, %v2465_v0  ;;  %v548_v16 = vunpack.c.l.b16 %v543_v58  ;;  %v542_v12 = vpack.c.bf16 %v540_v2, %v540_v2  ;;  %v556_v25 = vsel %vm207_vm2, %v544_v4, 0  ;;  %v601_v26 = vpack.c.bf16 %v599_v5, %v599_v5 }
  0xb2   :  { %2215 = vmatprep.subr.bf16.mxu0 %v2465_v0  ;;  %2221 = vmatprep.subr.bf16.mxu1 %v2465_v0  ;;  %v432_v15 = vsel %vm201_vm3, %v431_v57, %v429_v63  ;;  %v152_v6 = vadd.f32 %v139_v62, %v138_v59  ;;  %v491_v7 = vsel %vm201_vm3, %v490_v60, %v488_v1  ;;  %v607_v9 = vunpack.c.l.b16 %v602_v61  ;;  %v161_v60 = vld [vmem:[#allocation2 + $0x18] sm:$0xff]  ;;  %v777_v62 = vld [vmem:[#allocation2 + $0xa] sm:$0x1] }
  0xb3   :  { %v433_v24 = vpack.c.b16 %v432_v15, %v432_v15  ;;  %v492_v27 = vpack.c.b16 %v491_v7, %v491_v7  ;;  %v615_v28 = vsel %vm207_vm2, %v603_v8, 0  ;;  %v549_v29 = vrot.slane %v548_v16, 7  ;;  %v840_v15 = vld [vmem:[#allocation6 + $0x2c] sm:$0xf] }
  0xb4   :  { %v168_v22 = vadd.f32 %v160_v3, %v152_v6  ;;  %v662_v31 = vpack.c.bf16 %v660_v10, %v660_v10  ;;  %v608_v32 = vrot.slane %v607_v9, 7  ;;  %v721_v33 = vpack.c.bf16 %v719_v21, %v719_v21  ;;  %v781_v3 = vld [vmem:[#allocation6 + $0x28] sm:$0xf]  ;;  %v896_v8 = vld [vmem:[#allocation2 + $0x2c] sm:$0x1] }
  0xb5   :  { %v547_v34 = vunpack.c.l.b16 %v542_v12  ;;  %v606_v13 = vunpack.c.l.b16 %v601_v26  ;;  %v661_v37 = vpack.c.bf16 %v659_v30, %v659_v30  ;;  %v720_v43 = vpack.c.bf16 %v718_v35, %v718_v35  ;;  %v955_v9 = vld [vmem:[#allocation2 + $0x2d] sm:$0x1] }
  0xb6   :  { %177 = vst.msk [vmem:[#allocation2 + $0x10] sm:$0xff] %vm45_vm0, %v168_v22  ;;  %v667_v40 = vunpack.c.l.b16 %v662_v31  ;;  %v726_v44 = vunpack.c.l.b16 %v721_v33  ;;  %v148_v46 = vadd.f32 %v115_v11, %v2540_v17  ;;  %v675_v47 = vsel %vm207_vm2, %v663_v36, 0  ;;  %v899_v31 = vld [vmem:[#allocation6 + $0x30] sm:$0xf] }
  0xb7   :  { %2206 = vmatmul.mubr.msk.bf16.vlgmr.msra.gmra.mxu0 %vm45_vm0, %v315_v52  ;;  %2212 = vmatmul.mubr.msk.bf16.vlgmr.msra.gmra.mxu1 %vm45_vm0, %v374_v56  ;;  %v550_v38 = vsel %vm201_vm3, %v549_v29, %v547_v34  ;;  %v609_v42 = vsel %vm201_vm3, %v608_v32, %v606_v13  ;;  %v149_v49 = vadd.f32 %v117_v23, %v2542_v18  ;;  %v734_v52 = vsel %vm207_vm2, %v722_v39, 0  ;;  %v954_v29 = vld [vmem:[#allocation2 + $0xd] sm:$0x1]  ;;  %v958_v32 = vld [vmem:[#allocation6 + $0x34] sm:$0xf] }
  0xb8   :  { %2216 = vmatpush3.bf16.msra.mxu0 %v438_v48  ;;  %2222 = vmatpush3.bf16.msra.mxu1 %v497_v53  ;;  %v837_v48 = vld [vmem:[#allocation2 + $0x2b] sm:$0x1]  ;;  %v140_v50 = vadd.f32 %v99_v14, %v2548_v19  ;;  %v551_v51 = vpack.c.b16 %v550_v38, %v550_v38  ;;  %v666_v53 = vunpack.c.l.b16 %v661_v37  ;;  %v141_v55 = vadd.f32 %v101_v41, %v2550_v20  ;;  %v1014_v37 = vld [vmem:[#allocation2 + $0x2e] sm:$0x1]  ;;  %v1073_v14 = vld [vmem:[#allocation2 + $0x2f] sm:$0x1] }
  0xb9   :  { %2217 = vmatprep.mubr.msk.bf16.mxu0 %vm2466_vm1, %v2465_v0  ;;  %2223 = vmatprep.mubr.msk.bf16.mxu1 %vm2466_vm1, %v2465_v0  ;;  %v610_v56 = vpack.c.b16 %v609_v42, %v609_v42  ;;  %v668_v57 = vrot.slane %v667_v40, 7  ;;  %v780_v58 = vpack.c.bf16 %v778_v45, %v778_v45  ;;  %v157_v59 = vadd.f32 %v149_v49, %v148_v46  ;;  %v836_v19 = vld [vmem:[#allocation2 + $0xb] sm:$0x1]  ;;  %v1072_v49 = vld [vmem:[#allocation2 + $0xf] sm:$0x1] }
  0xba   :  { %2227 = vmatprep.subr.bf16.mxu0 %v2465_v0  ;;  %2233 = vmatprep.subr.bf16.mxu1 %v2465_v0  ;;  %v725_v17 = vunpack.c.l.b16 %v720_v43  ;;  %v727_v61 = vrot.slane %v726_v44, 7  ;;  %v839_v18 = vpack.c.bf16 %v837_v48, %v837_v48  ;;  %v153_v63 = vadd.f32 %v141_v55, %v140_v50 }
  0xbb   :  { %v173_v1 = vadd.f32 %v165_v54, %v157_v59  ;;  %v669_v2 = vsel %vm201_vm3, %v668_v57, %v666_v53  ;;  %v779_v4 = vpack.c.bf16 %v777_v62, %v777_v62  ;;  %v785_v16 = vunpack.c.l.b16 %v780_v58  ;;  %v1133_v58 = vld [vmem:[#allocation2 + $0x30] sm:$0x1]  ;;  %v1192_v59 = vld [vmem:[#allocation2 + $0x31] sm:$0x1] }
  0xbc   :  { %v169_v20 = vadd.f32 %v161_v60, %v153_v63  ;;  %v728_v5 = vsel %vm201_vm3, %v727_v61, %v725_v17  ;;  %v838_v6 = vpack.c.bf16 %v836_v19, %v836_v19  ;;  %v844_v7 = vunpack.c.l.b16 %v839_v18 }
  0xbd   :  { %182 = vst.msk [vmem:[#allocation2 + $0x38] sm:$0xff] %vm45_vm0, %v173_v1  ;;  %v670_v10 = vpack.c.b16 %v669_v2, %v669_v2  ;;  %v793_v11 = vsel %vm207_vm2, %v781_v3, 0  ;;  %v852_v12 = vsel %vm207_vm2, %v840_v15, 0  ;;  %v729_v21 = vpack.c.b16 %v728_v5, %v728_v5  ;;  %v1132_v2 = vld [vmem:[#allocation2 + $0x10] sm:$0x1] }
  0xbe   :  { %178 = vst.msk [vmem:[#allocation2 + $0x18] sm:$0xff] %vm45_vm0, %v169_v20  ;;  %v784_v22 = vunpack.c.l.b16 %v779_v4  ;;  %v786_v23 = vrot.slane %v785_v16, 7  ;;  %v845_v26 = vrot.slane %v844_v7, 7  ;;  %v956_v13 = vpack.c.bf16 %v954_v29, %v954_v29  ;;  %v1191_v15 = vld [vmem:[#allocation2 + $0x11] sm:$0x1] }
  0xbf   :  { %2218 = vmatmul.mubr.msk.bf16.vlgmr.msra.gmra.mxu0 %vm45_vm0, %v433_v24  ;;  %2224 = vmatmul.mubr.msk.bf16.vlgmr.msra.gmra.mxu1 %vm45_vm0, %v492_v27  ;;  %v898_v24 = vpack.c.bf16 %v896_v8, %v896_v8  ;;  %v895_v27 = vld [vmem:[#allocation2 + $0xc] sm:$0x1]  ;;  %v911_v39 = vsel %vm207_vm2, %v899_v31, 0  ;;  %v970_v40 = vsel %vm207_vm2, %v958_v32, 0  ;;  %v1016_v44 = vpack.c.bf16 %v1014_v37, %v1014_v37  ;;  %v1136_v16 = vld [vmem:[#allocation6 + $0x40] sm:$0xf] }
  0xc0   :  { %2228 = vmatpush3.bf16.msra.mxu0 %v556_v25  ;;  %2234 = vmatpush3.bf16.msra.mxu1 %v615_v28  ;;  %v843_v25 = vunpack.c.l.b16 %v838_v6  ;;  %v957_v28 = vpack.c.bf16 %v955_v9, %v955_v9  ;;  %v787_v30 = vsel %vm201_vm3, %v786_v23, %v784_v22  ;;  %v897_v33 = vpack.c.bf16 %v895_v27, %v895_v27  ;;  %v1195_v5 = vld [vmem:[#allocation6 + $0x44] sm:$0xf]  ;;  %v1309_v32 = vld [vmem:[#allocation2 + $0x13] sm:$0x1] }
  0xc1   :  { %2229 = vmatprep.mubr.msk.bf16.mxu0 %vm2466_vm1, %v2465_v0  ;;  %2235 = vmatprep.mubr.msk.bf16.mxu1 %vm2466_vm1, %v2465_v0  ;;  %v903_v34 = vunpack.c.l.b16 %v898_v24  ;;  %v788_v38 = vpack.c.b16 %v787_v30, %v787_v30  ;;  %v961_v45 = vunpack.c.l.b16 %v956_v13  ;;  %v1075_v48 = vpack.c.bf16 %v1073_v14, %v1073_v14  ;;  %v1250_v30 = vld [vmem:[#allocation2 + $0x12] sm:$0x1] }
  0xc2   :  { %2239 = vmatprep.subr.bf16.mxu0 %v2465_v0  ;;  %2245 = vmatprep.subr.bf16.mxu1 %v2465_v0  ;;  %v846_v35 = vsel %vm201_vm3, %v845_v26, %v843_v25  ;;  %v962_v36 = vunpack.c.l.b16 %v957_v28  ;;  %v902_v42 = vunpack.c.l.b16 %v897_v33  ;;  %v1021_v54 = vunpack.c.l.b16 %v1016_v44 }
  0xc3   :  { %v847_v41 = vpack.c.b16 %v846_v35, %v846_v35  ;;  %v904_v43 = vrot.slane %v903_v34, 7  ;;  %v1080_v57 = vunpack.c.l.b16 %v1075_v48  ;;  %v1135_v19 = vpack.c.bf16 %v1133_v58, %v1133_v58  ;;  %v1254_v34 = vld [vmem:[#allocation6 + $0x48] sm:$0xf]  ;;  %v1313_v35 = vld [vmem:[#allocation6 + $0x4c] sm:$0xf] }
  0xc4   :  { %v963_v46 = vrot.slane %v962_v36, 7  ;;  %v1022_v63 = vrot.slane %v1021_v54, 7  ;;  %v1194_v3 = vpack.c.bf16 %v1192_v59, %v1192_v59  ;;  %v1134_v6 = vpack.c.bf16 %v1132_v2, %v1132_v2  ;;  %v1372_v54 = vld [vmem:[#allocation6 + $0x50] sm:$0xf] }
  0xc5   :  { %v905_v50 = vsel %vm201_vm3, %v904_v43, %v902_v42  ;;  %v1081_v20 = vrot.slane %v1080_v57, 7  ;;  %v1140_v7 = vunpack.c.l.b16 %v1135_v19  ;;  %v1193_v9 = vpack.c.bf16 %v1191_v15, %v1191_v15 }
  0xc6   :  { %v964_v55 = vsel %vm201_vm3, %v963_v46, %v961_v45  ;;  %v906_v60 = vpack.c.b16 %v905_v50, %v905_v50  ;;  %v1148_v22 = vsel %vm207_vm2, %v1136_v16, 0  ;;  %v1207_v23 = vsel %vm207_vm2, %v1195_v5, 0  ;;  %v1368_v50 = vld [vmem:[#allocation2 + $0x14] sm:$0x1]  ;;  %v1545_v5 = vld [vmem:[#allocation2 + $0x17] sm:$0x1] }
  0xc7   :  { %2230 = vmatmul.mubr.msk.bf16.vlgmr.msra.gmra.mxu0 %vm45_vm0, %v551_v51  ;;  %2236 = vmatmul.mubr.msk.bf16.vlgmr.msra.gmra.mxu1 %vm45_vm0, %v610_v56  ;;  %v1017_v51 = vld [vmem:[#allocation6 + $0x38] sm:$0xf]  ;;  %v1074_v56 = vpack.c.bf16 %v1072_v49, %v1072_v49  ;;  %v965_v62 = vpack.c.b16 %v964_v55, %v964_v55  ;;  %v1139_v25 = vunpack.c.l.b16 %v1134_v6  ;;  %v1141_v26 = vrot.slane %v1140_v7, 7  ;;  %v1431_v55 = vld [vmem:[#allocation6 + $0x54] sm:$0xf] }
  0xc8   :  { %2240 = vmatpush3.bf16.msra.mxu0 %v675_v47  ;;  %2246 = vmatpush3.bf16.msra.mxu1 %v734_v52  ;;  %v1013_v47 = vld [vmem:[#allocation2 + $0xe] sm:$0x1]  ;;  %v1076_v52 = vld [vmem:[#allocation6 + $0x3c] sm:$0xf]  ;;  %v1029_v17 = vsel %vm207_vm2, %v1017_v51, 0  ;;  %v1198_v28 = vunpack.c.l.b16 %v1193_v9  ;;  %v1252_v13 = vpack.c.bf16 %v1250_v30, %v1250_v30  ;;  %v1311_v14 = vpack.c.bf16 %v1309_v32, %v1309_v32 }
  0xc9   :  { %2241 = vmatprep.mubr.msk.bf16.mxu0 %vm2466_vm1, %v2465_v0  ;;  %2247 = vmatprep.mubr.msk.bf16.mxu1 %vm2466_vm1, %v2465_v0  ;;  %v1015_v53 = vpack.c.bf16 %v1013_v47, %v1013_v47  ;;  %v1088_v61 = vsel %vm207_vm2, %v1076_v52, 0  ;;  %v1079_v1 = vunpack.c.l.b16 %v1074_v56  ;;  %v1142_v33 = vsel %vm201_vm3, %v1141_v26, %v1139_v25  ;;  %v1427_v52 = vld [vmem:[#allocation2 + $0x15] sm:$0x1]  ;;  %v1490_v7 = vld [vmem:[#allocation6 + $0x58] sm:$0xf] }
  0xca   :  { %2251 = vmatprep.subr.bf16.mxu0 %v2465_v0  ;;  %2257 = vmatprep.subr.bf16.mxu1 %v2465_v0  ;;  %v1266_v42 = vsel %vm207_vm2, %v1254_v34, 0  ;;  %v1325_v43 = vsel %vm207_vm2, %v1313_v35, 0  ;;  %v1257_v45 = vunpack.c.l.b16 %v1252_v13  ;;  %v1316_v48 = vunpack.c.l.b16 %v1311_v14  ;;  %v1664_v35 = vld [vmem:[#allocation2 + $0x19] sm:$0x1] }
  0xcb   :  { %v1020_v18 = vunpack.c.l.b16 %v1015_v53  ;;  %v1082_v8 = vsel %vm201_vm3, %v1081_v20, %v1079_v1  ;;  %v1370_v56 = vpack.c.bf16 %v1368_v50, %v1368_v50  ;;  %v1429_v59 = vpack.c.bf16 %v1427_v52, %v1427_v52 }
  0xcc   :  { %v1083_v24 = vpack.c.b16 %v1082_v8, %v1082_v8  ;;  %v1549_v8 = vld [vmem:[#allocation6 + $0x5c] sm:$0xf]  ;;  %v1502_v25 = vsel %vm207_vm2, %v1490_v7, 0 }
  0xcd   :  { %v1023_v4 = vsel %vm201_vm3, %v1022_v63, %v1020_v18  ;;  %v1384_v18 = vsel %vm207_vm2, %v1372_v54, 0  ;;  %v1443_v63 = vsel %vm207_vm2, %v1431_v55, 0  ;;  %v1375_v1 = vunpack.c.l.b16 %v1370_v56  ;;  %v1782_v55 = vld [vmem:[#allocation2 + $0x1b] sm:$0x1] }
  0xce   :  { %v1561_v26 = vsel %vm207_vm2, %v1549_v8, 0  ;;  %v1900_v8 = vld [vmem:[#allocation2 + $0x1d] sm:$0x1] }
  0xcf   :  { %2242 = vmatmul.mubr.msk.bf16.vlgmr.msra.gmra.mxu0 %vm45_vm0, %v670_v10  ;;  %2248 = vmatmul.mubr.msk.bf16.vlgmr.msra.gmra.mxu1 %vm45_vm0, %v729_v21  ;;  %v1199_v10 = vunpack.c.l.b16 %v1194_v3  ;;  %v1024_v21 = vpack.c.b16 %v1023_v4, %v1023_v4  ;;  %v1434_v3 = vunpack.c.l.b16 %v1429_v59  ;;  %v1486_v4 = vld [vmem:[#allocation2 + $0x16] sm:$0x1] }
  0xd0   :  { %2252 = vmatpush3.bf16.msra.mxu0 %v793_v11  ;;  %2258 = vmatpush3.bf16.msra.mxu1 %v852_v12  ;;  %v1251_v11 = vld [vmem:[#allocation2 + $0x32] sm:$0x1]  ;;  %v1310_v12 = vld [vmem:[#allocation2 + $0x33] sm:$0x1]  ;;  %v1488_v9 = vpack.c.bf16 %v1486_v4, %v1486_v4 }
  0xd1   :  { %2253 = vmatprep.mubr.msk.bf16.mxu0 %vm2466_vm1, %v2465_v0  ;;  %2259 = vmatprep.mubr.msk.bf16.mxu1 %vm2466_vm1, %v2465_v0  ;;  %v1253_v27 = vpack.c.bf16 %v1251_v11, %v1251_v11  ;;  %v1200_v29 = vrot.slane %v1199_v10, 7  ;;  %v1312_v31 = vpack.c.bf16 %v1310_v12, %v1310_v12  ;;  %v1547_v12 = vpack.c.bf16 %v1545_v5, %v1545_v5 }
  0xd2   :  { %2263 = vmatprep.subr.bf16.mxu0 %v2465_v0  ;;  %2269 = vmatprep.subr.bf16.mxu1 %v2465_v0 }
  0xd3   :  { %v1258_v36 = vunpack.c.l.b16 %v1253_v27  ;;  %v1201_v37 = vsel %vm201_vm3, %v1200_v29, %v1198_v28  ;;  %v1493_v28 = vunpack.c.l.b16 %v1488_v9 }
  0xd4   :  { %v1202_v44 = vpack.c.b16 %v1201_v37, %v1201_v37  ;;  %v1668_v37 = vld [vmem:[#allocation6 + $0x64] sm:$0xf] }
  0xd5   :  { %v1259_v46 = vrot.slane %v1258_v36, 7  ;;  %v1609_v36 = vld [vmem:[#allocation6 + $0x60] sm:$0xf] }
  0xd7   :  { %2254 = vmatmul.mubr.msk.bf16.vlgmr.msra.gmra.mxu0 %vm45_vm0, %v788_v38  ;;  %2260 = vmatmul.mubr.msk.bf16.vlgmr.msra.gmra.mxu1 %vm45_vm0, %v847_v41  ;;  %v1317_v38 = vunpack.c.l.b16 %v1312_v31  ;;  %v1143_v41 = vpack.c.b16 %v1142_v33, %v1142_v33  ;;  %v1260_v53 = vsel %vm201_vm3, %v1259_v46, %v1257_v45  ;;  %v1552_v31 = vunpack.c.l.b16 %v1547_v12  ;;  %v1605_v33 = vld [vmem:[#allocation2 + $0x18] sm:$0x1] }
  0xd8   :  { %2264 = vmatpush3.bf16.msra.mxu0 %v911_v39  ;;  %2270 = vmatpush3.bf16.msra.mxu1 %v970_v40  ;;  %v1369_v39 = vld [vmem:[#allocation2 + $0x34] sm:$0x1]  ;;  %v1428_v40 = vld [vmem:[#allocation2 + $0x35] sm:$0x1]  ;;  %v1607_v14 = vpack.c.bf16 %v1605_v33, %v1605_v33  ;;  %v1621_v45 = vsel %vm207_vm2, %v1609_v36, 0  ;;  %v1680_v46 = vsel %vm207_vm2, %v1668_v37, 0 }
  0xd9   :  { %2265 = vmatprep.mubr.msk.bf16.mxu0 %vm2466_vm1, %v2465_v0  ;;  %2271 = vmatprep.mubr.msk.bf16.mxu1 %vm2466_vm1, %v2465_v0  ;;  %v1371_v47 = vpack.c.bf16 %v1369_v39, %v1369_v39  ;;  %v1318_v49 = vrot.slane %v1317_v38, 7  ;;  %v1430_v51 = vpack.c.bf16 %v1428_v40, %v1428_v40  ;;  %v1666_v40 = vpack.c.bf16 %v1664_v35, %v1664_v35  ;;  %v2018_v37 = vld [vmem:[#allocation2 + $0x1f] sm:$0x1] }
  0xda   :  { %2275 = vmatprep.subr.bf16.mxu0 %v2465_v0  ;;  %2281 = vmatprep.subr.bf16.mxu1 %v2465_v0 }
  0xdb   :  { %v1376_v57 = vunpack.c.l.b16 %v1371_v47  ;;  %v1319_v58 = vsel %vm201_vm3, %v1318_v49, %v1316_v48  ;;  %v1612_v48 = vunpack.c.l.b16 %v1607_v14 }
  0xdc   :  { %v1320_v19 = vpack.c.b16 %v1319_v58, %v1319_v58  ;;  %v1786_v58 = vld [vmem:[#allocation6 + $0x6c] sm:$0xf] }
  0xdd   :  { %v1377_v20 = vrot.slane %v1376_v57, 7  ;;  %v1727_v57 = vld [vmem:[#allocation6 + $0x68] sm:$0xf] }
  0xdf   :  { %2266 = vmatmul.mubr.msk.bf16.vlgmr.msra.gmra.mxu0 %vm45_vm0, %v906_v60  ;;  %2272 = vmatmul.mubr.msk.bf16.vlgmr.msra.gmra.mxu1 %vm45_vm0, %v965_v62  ;;  %v1435_v60 = vunpack.c.l.b16 %v1430_v51  ;;  %v1261_v62 = vpack.c.b16 %v1260_v53, %v1260_v53  ;;  %v1378_v6 = vsel %vm201_vm3, %v1377_v20, %v1375_v1  ;;  %v1671_v51 = vunpack.c.l.b16 %v1666_v40  ;;  %v1723_v53 = vld [vmem:[#allocation2 + $0x1a] sm:$0x1] }
  0xe0   :  { %2276 = vmatpush3.bf16.msra.mxu0 %v1029_v17  ;;  %2282 = vmatpush3.bf16.msra.mxu1 %v1088_v61  ;;  %v1487_v17 = vld [vmem:[#allocation2 + $0x36] sm:$0x1]  ;;  %v1546_v61 = vld [vmem:[#allocation2 + $0x37] sm:$0x1]  ;;  %v1725_v59 = vpack.c.bf16 %v1723_v53, %v1723_v53  ;;  %v1739_v1 = vsel %vm207_vm2, %v1727_v57, 0  ;;  %v1798_v20 = vsel %vm207_vm2, %v1786_v58, 0 }
  0xe1   :  { %2277 = vmatprep.mubr.msk.bf16.mxu0 %vm2466_vm1, %v2465_v0  ;;  %2283 = vmatprep.mubr.msk.bf16.mxu1 %vm2466_vm1, %v2465_v0  ;;  %v1489_v2 = vpack.c.bf16 %v1487_v17, %v1487_v17  ;;  %v1436_v15 = vrot.slane %v1435_v60, 7  ;;  %v1548_v16 = vpack.c.bf16 %v1546_v61, %v1546_v61  ;;  %v1784_v61 = vpack.c.bf16 %v1782_v55, %v1782_v55 }
  0xe2   :  { %2287 = vmatprep.subr.bf16.mxu0 %v2465_v0  ;;  %2293 = vmatprep.subr.bf16.mxu1 %v2465_v0 }
  0xe3   :  { %v1494_v10 = vunpack.c.l.b16 %v1489_v2  ;;  %v1437_v11 = vsel %vm201_vm3, %v1436_v15, %v1434_v3  ;;  %v1730_v3 = vunpack.c.l.b16 %v1725_v59 }
  0xe4   :  { %v1438_v27 = vpack.c.b16 %v1437_v11, %v1437_v11  ;;  %v1904_v11 = vld [vmem:[#allocation6 + $0x74] sm:$0xf] }
  0xe5   :  { %v1495_v29 = vrot.slane %v1494_v10, 7  ;;  %v1845_v10 = vld [vmem:[#allocation6 + $0x70] sm:$0xf] }
  0xe7   :  { %2278 = vmatmul.mubr.msk.bf16.vlgmr.msra.gmra.mxu0 %vm45_vm0, %v1024_v21  ;;  %2284 = vmatmul.mubr.msk.bf16.vlgmr.msra.gmra.mxu1 %vm45_vm0, %v1083_v24  ;;  %v1553_v21 = vunpack.c.l.b16 %v1548_v16  ;;  %v1379_v24 = vpack.c.b16 %v1378_v6, %v1378_v6  ;;  %v1496_v13 = vsel %vm201_vm3, %v1495_v29, %v1493_v28  ;;  %v1789_v16 = vunpack.c.l.b16 %v1784_v61  ;;  %v1841_v6 = vld [vmem:[#allocation2 + $0x1c] sm:$0x1] }
  0xe8   :  { %2288 = vmatpush3.bf16.msra.mxu0 %v1148_v22  ;;  %2294 = vmatpush3.bf16.msra.mxu1 %v1207_v23  ;;  %v1606_v22 = vld [vmem:[#allocation2 + $0x38] sm:$0x1]  ;;  %v1665_v23 = vld [vmem:[#allocation2 + $0x39] sm:$0x1]  ;;  %v1843_v12 = vpack.c.bf16 %v1841_v6, %v1841_v6  ;;  %v1857_v28 = vsel %vm207_vm2, %v1845_v10, 0  ;;  %v1916_v29 = vsel %vm207_vm2, %v1904_v11, 0 }
  0xe9   :  { %2289 = vmatprep.mubr.msk.bf16.mxu0 %vm2466_vm1, %v2465_v0  ;;  %2295 = vmatprep.mubr.msk.bf16.mxu1 %vm2466_vm1, %v2465_v0  ;;  %v1608_v30 = vpack.c.bf16 %v1606_v22, %v1606_v22  ;;  %v1554_v32 = vrot.slane %v1553_v21, 7  ;;  %v1667_v34 = vpack.c.bf16 %v1665_v23, %v1665_v23  ;;  %v1902_v23 = vpack.c.bf16 %v1900_v8, %v1900_v8 }
  0xea   :  { %2299 = vmatprep.subr.bf16.mxu0 %v2465_v0  ;;  %2305 = vmatprep.subr.bf16.mxu1 %v2465_v0 }
  0xeb   :  { %v1613_v38 = vunpack.c.l.b16 %v1608_v30  ;;  %v1555_v39 = vsel %vm201_vm3, %v1554_v32, %v1552_v31  ;;  %v1848_v31 = vunpack.c.l.b16 %v1843_v12 }
  0xec   :  { %v1556_v47 = vpack.c.b16 %v1555_v39, %v1555_v39 }
  0xed   :  { %v1614_v49 = vrot.slane %v1613_v38, 7  ;;  %v1963_v38 = vld [vmem:[#allocation6 + $0x78] sm:$0xf] }
  0xef   :  { %2290 = vmatmul.mubr.msk.bf16.vlgmr.msra.gmra.mxu0 %vm45_vm0, %v1143_v41  ;;  %2296 = vmatmul.mubr.msk.bf16.vlgmr.msra.gmra.mxu1 %vm45_vm0, %v1202_v44  ;;  %v1672_v41 = vunpack.c.l.b16 %v1667_v34  ;;  %v1497_v44 = vpack.c.b16 %v1496_v13, %v1496_v13  ;;  %v1615_v56 = vsel %vm201_vm3, %v1614_v49, %v1612_v48  ;;  %v1907_v34 = vunpack.c.l.b16 %v1902_v23  ;;  %v1959_v13 = vld [vmem:[#allocation2 + $0x1e] sm:$0x1] }
  0xf0   :  { %2300 = vmatpush3.bf16.msra.mxu0 %v1266_v42  ;;  %2306 = vmatpush3.bf16.msra.mxu1 %v1325_v43  ;;  %v1724_v42 = vld [vmem:[#allocation2 + $0x3a] sm:$0x1]  ;;  %v1783_v43 = vld [vmem:[#allocation2 + $0x3b] sm:$0x1]  ;;  %v1961_v39 = vpack.c.bf16 %v1959_v13, %v1959_v13 }
  0xf1   :  { %2301 = vmatprep.mubr.msk.bf16.mxu0 %vm2466_vm1, %v2465_v0  ;;  %2307 = vmatprep.mubr.msk.bf16.mxu1 %vm2466_vm1, %v2465_v0  ;;  %v1726_v50 = vpack.c.bf16 %v1724_v42, %v1724_v42  ;;  %v1673_v52 = vrot.slane %v1672_v41, 7  ;;  %v1785_v54 = vpack.c.bf16 %v1783_v43, %v1783_v43  ;;  %v2022_v42 = vld [vmem:[#allocation6 + $0x7c] sm:$0xf]  ;;  %v2020_v43 = vpack.c.bf16 %v2018_v37, %v2018_v37 }
  0xf2   :  { %2311 = vmatprep.subr.bf16.mxu0 %v2465_v0  ;;  %2317 = vmatprep.subr.bf16.mxu1 %v2465_v0  ;;  %v2034_v48 = vsel %vm207_vm2, %v2022_v42, 0  ;;  %v1966_v49 = vunpack.c.l.b16 %v1961_v39 }
  0xf3   :  { %v1731_v60 = vunpack.c.l.b16 %v1726_v50  ;;  %v1674_v17 = vsel %vm201_vm3, %v1673_v52, %v1671_v51  ;;  %v2025_v51 = vunpack.c.l.b16 %v2020_v43 }
  0xf4   :  { %v1675_v2 = vpack.c.b16 %v1674_v17, %v1674_v17 }
  0xf5   :  { %v1732_v15 = vrot.slane %v1731_v60, 7 }
  0xf7   :  { %2302 = vmatmul.mubr.msk.bf16.vlgmr.msra.gmra.mxu0 %vm45_vm0, %v1261_v62  ;;  %2308 = vmatmul.mubr.msk.bf16.vlgmr.msra.gmra.mxu1 %vm45_vm0, %v1320_v19  ;;  %v1790_v62 = vunpack.c.l.b16 %v1785_v54  ;;  %v1616_v19 = vpack.c.b16 %v1615_v56, %v1615_v56  ;;  %v1733_v9 = vsel %vm201_vm3, %v1732_v15, %v1730_v3 }
  0xf8   :  { %2312 = vmatpush3.bf16.msra.mxu0 %v1384_v18  ;;  %2318 = vmatpush3.bf16.msra.mxu1 %v1443_v63  ;;  %v1842_v18 = vld [vmem:[#allocation2 + $0x3c] sm:$0x1]  ;;  %v1901_v63 = vld [vmem:[#allocation2 + $0x3d] sm:$0x1] }
  0xf9   :  { %2313 = vmatprep.mubr.msk.bf16.mxu0 %vm2466_vm1, %v2465_v0  ;;  %2319 = vmatprep.mubr.msk.bf16.mxu1 %vm2466_vm1, %v2465_v0  ;;  %v1844_v4 = vpack.c.bf16 %v1842_v18, %v1842_v18  ;;  %v1791_v5 = vrot.slane %v1790_v62, 7  ;;  %v1903_v7 = vpack.c.bf16 %v1901_v63, %v1901_v63 }
  0xfa   :  { %2323 = vmatprep.subr.bf16.mxu0 %v2465_v0  ;;  %2329 = vmatprep.subr.bf16.mxu1 %v2465_v0 }
  0xfb   :  { %v1849_v21 = vunpack.c.l.b16 %v1844_v4  ;;  %v1792_v22 = vsel %vm201_vm3, %v1791_v5, %v1789_v16 }
  0xfc   :  { %v1793_v30 = vpack.c.b16 %v1792_v22, %v1792_v22 }
  0xfd   :  { %v1850_v32 = vrot.slane %v1849_v21, 7 }
  0xff   :  { %2314 = vmatmul.mubr.msk.bf16.vlgmr.msra.gmra.mxu0 %vm45_vm0, %v1379_v24  ;;  %2320 = vmatmul.mubr.msk.bf16.vlgmr.msra.gmra.mxu1 %vm45_vm0, %v1438_v27  ;;  %v1908_v24 = vunpack.c.l.b16 %v1903_v7  ;;  %v1734_v27 = vpack.c.b16 %v1733_v9, %v1733_v9  ;;  %v1851_v14 = vsel %vm201_vm3, %v1850_v32, %v1848_v31 }
 0x100   :  { %2324 = vmatpush3.bf16.msra.mxu0 %v1502_v25  ;;  %2330 = vmatpush3.bf16.msra.mxu1 %v1561_v26  ;;  %v1960_v25 = vld [vmem:[#allocation2 + $0x3e] sm:$0x1]  ;;  %v2019_v26 = vld [vmem:[#allocation2 + $0x3f] sm:$0x1] }
 0x101   :  { %2325 = vmatprep.mubr.msk.bf16.mxu0 %vm2466_vm1, %v2465_v0  ;;  %2331 = vmatprep.mubr.msk.bf16.mxu1 %vm2466_vm1, %v2465_v0  ;;  %v1962_v33 = vpack.c.bf16 %v1960_v25, %v1960_v25  ;;  %v1909_v35 = vrot.slane %v1908_v24, 7  ;;  %v2021_v36 = vpack.c.bf16 %v2019_v26, %v2019_v26 }
 0x102   :  { %2335 = vmatprep.subr.bf16.mxu0 %v2465_v0  ;;  %2341 = vmatprep.subr.bf16.mxu1 %v2465_v0 }
 0x103   :  { %v1967_v40 = vunpack.c.l.b16 %v1962_v33  ;;  %v1910_v41 = vsel %vm201_vm3, %v1909_v35, %v1907_v34 }
 0x105   :  { %v1968_v50 = vrot.slane %v1967_v40, 7 }
 0x107   :  { %2326 = vmatmul.mubr.msk.bf16.vlgmr.msra.gmra.mxu0 %vm45_vm0, %v1497_v44  ;;  %2332 = vmatmul.mubr.msk.bf16.vlgmr.msra.gmra.mxu1 %vm45_vm0, %v1556_v47  ;;  %v2026_v44 = vunpack.c.l.b16 %v2021_v36  ;;  %v1911_v47 = vpack.c.b16 %v1910_v41, %v1910_v41  ;;  %v1969_v53 = vsel %vm201_vm3, %v1968_v50, %v1966_v49 }
 0x108   :  { %2336 = vmatpush3.bf16.msra.mxu0 %v1621_v45  ;;  %2342 = vmatpush3.bf16.msra.mxu1 %v1680_v46  ;;  %v1852_v45 = vpack.c.b16 %v1851_v14, %v1851_v14  ;;  %v1975_v46 = vsel %vm207_vm2, %v1963_v38, 0  ;;  %v1970_v55 = vpack.c.b16 %v1969_v53, %v1969_v53 }
 0x109   :  { %2337 = vmatprep.mubr.msk.bf16.mxu0 %vm2466_vm1, %v2465_v0  ;;  %2343 = vmatprep.mubr.msk.bf16.mxu1 %vm2466_vm1, %v2465_v0  ;;  %v2027_v52 = vrot.slane %v2026_v44, 7 }
 0x10a   :  { %2347 = vmatprep.subr.bf16.mxu0 %v2465_v0  ;;  %2353 = vmatprep.subr.bf16.mxu1 %v2465_v0 }
 0x10b   :  { %v2028_v54 = vsel %vm201_vm3, %v2027_v52, %v2025_v51 }
 0x10c   :  { %v2029_v56 = vpack.c.b16 %v2028_v54, %v2028_v54 }
 0x10f   :  { %2338 = vmatmul.mubr.msk.bf16.vlgmr.msra.gmra.mxu0 %vm45_vm0, %v1616_v19  ;;  %2344 = vmatmul.mubr.msk.bf16.vlgmr.msra.gmra.mxu1 %vm45_vm0, %v1675_v2 }
 0x110   :  { %2348 = vmatpush3.bf16.msra.mxu0 %v1739_v1  ;;  %2354 = vmatpush3.bf16.msra.mxu1 %v1798_v20 }
 0x111   :  { %2349 = vmatprep.mubr.msk.bf16.mxu0 %vm2466_vm1, %v2465_v0  ;;  %2355 = vmatprep.mubr.msk.bf16.mxu1 %vm2466_vm1, %v2465_v0 }
 0x112   :  { %2359 = vmatprep.subr.bf16.mxu0 %v2465_v0  ;;  %2365 = vmatprep.subr.bf16.mxu1 %v2465_v0 }
 0x117   :  { %2350 = vmatmul.mubr.msk.bf16.vlgmr.msra.gmra.mxu0 %vm45_vm0, %v1734_v27  ;;  %2356 = vmatmul.mubr.msk.bf16.vlgmr.msra.gmra.mxu1 %vm45_vm0, %v1793_v30 }
 0x118   :  { %2360 = vmatpush3.bf16.msra.mxu0 %v1857_v28  ;;  %2366 = vmatpush3.bf16.msra.mxu1 %v1916_v29 }
 0x119   :  { %2361 = vmatprep.mubr.msk.bf16.mxu0 %vm2466_vm1, %v2465_v0  ;;  %2367 = vmatprep.mubr.msk.bf16.mxu1 %vm2466_vm1, %v2465_v0 }
 0x11a   :  { %2371 = vmatprep.subr.bf16.mxu0 %v2465_v0  ;;  %2377 = vmatprep.subr.bf16.mxu1 %v2465_v0 }
 0x11f   :  { %2362 = vmatmul.mubr.msk.bf16.vlgmr.msra.gmra.mxu0 %vm45_vm0, %v1852_v45  ;;  %2368 = vmatmul.mubr.msk.bf16.vlgmr.msra.gmra.mxu1 %vm45_vm0, %v1911_v47 }
 0x120   :  { %2372 = vmatpush3.bf16.msra.mxu0 %v1975_v46  ;;  %2378 = vmatpush3.bf16.msra.mxu1 %v2034_v48 }
 0x121   :  { %2373 = vmatprep.mubr.msk.bf16.mxu0 %vm2466_vm1, %v2465_v0  ;;  %2379 = vmatprep.mubr.msk.bf16.mxu1 %vm2466_vm1, %v2465_v0 }
 0x127   :  { %2374 = vmatmul.mubr.msk.bf16.vlgmr.msra.gmra.mxu0 %vm45_vm0, %v1970_v55  ;;  %2380 = vmatmul.mubr.msk.bf16.vlgmr.msra.gmra.mxu1 %vm45_vm0, %v2029_v56 }
 0x16f   :  { %v245_v57 = vpop.f32.mrf.mxu0  ;;  %v298_v58 = vpop.f32.mrf.mxu1 }
 0x170   :  { %v299_v30 = vadd.f32 %v298_v58, %v245_v57 }
 0x171   :  { %v2195_v59 = vpop.f32.mrf.mxu0  ;;  %v2201_v60 = vpop.f32.mrf.mxu1 }
 0x173   :  { %v248_v17 = vpop.f32.mrf.mxu0  ;;  %v301_v61 = vpop.f32.mrf.mxu1 }
 0x175   :  { %v2196_v62 = vpop.f32.mrf.mxu0  ;;  %v2202_v18 = vpop.f32.mrf.mxu1 }
 0x177   :  { %v356_v63 = vpop.f32.mrf.mxu0  ;;  %v415_v0 = vpop.f32.mrf.mxu1 }
 0x178   :  { %v362_v33 = vadd.f32 %v356_v63, %v299_v30 }
 0x179   :  { %v2207_v19 = vpop.f32.mrf.mxu0  ;;  %v2213_v1 = vpop.f32.mrf.mxu1 }
 0x17a   :  { %v421_v37 = vadd.f32 %v415_v0, %v362_v33 }
 0x17b   :  { %v359_v20 = vpop.f32.mrf.mxu0  ;;  %v418_v2 = vpop.f32.mrf.mxu1 }
 0x17d   :  { %v2208_v3 = vpop.f32.mrf.mxu0  ;;  %v2214_v15 = vpop.f32.mrf.mxu1 }
 0x17f   :  { %v474_v4 = vpop.f32.mrf.mxu0  ;;  %v533_v16 = vpop.f32.mrf.mxu1 }
 0x180   :  { %v480_v39 = vadd.f32 %v474_v4, %v421_v37 }
 0x181   :  { %v2219_v5 = vpop.f32.mrf.mxu0  ;;  %v2225_v6 = vpop.f32.mrf.mxu1 }
 0x182   :  { %v539_v44 = vadd.f32 %v533_v16, %v480_v39 }
 0x183   :  { %v477_v7 = vpop.f32.mrf.mxu0  ;;  %v536_v8 = vpop.f32.mrf.mxu1 }
 0x185   :  { %v2220_v9 = vpop.f32.mrf.mxu0  ;;  %v2226_v10 = vpop.f32.mrf.mxu1 }
 0x187   :  { %v592_v11 = vpop.f32.mrf.mxu0  ;;  %v651_v12 = vpop.f32.mrf.mxu1 }
 0x188   :  { %v598_v47 = vadd.f32 %v592_v11, %v539_v44 }
 0x189   :  { %v2231_v21 = vpop.f32.mrf.mxu0  ;;  %v2237_v22 = vpop.f32.mrf.mxu1 }
 0x18a   :  { %v657_v52 = vadd.f32 %v651_v12, %v598_v47 }
 0x18b   :  { %v595_v23 = vpop.f32.mrf.mxu0  ;;  %v654_v24 = vpop.f32.mrf.mxu1 }
 0x18d   :  { %v2232_v25 = vpop.f32.mrf.mxu0  ;;  %v2238_v26 = vpop.f32.mrf.mxu1 }
 0x18f   :  { %v711_v27 = vpop.f32.mrf.mxu0  ;;  %v770_v28 = vpop.f32.mrf.mxu1 }
 0x190   :  { %v717_v55 = vadd.f32 %v711_v27, %v657_v52 }
 0x191   :  { %v2243_v29 = vpop.f32.mrf.mxu0  ;;  %v2249_v31 = vpop.f32.mrf.mxu1 }
 0x192   :  { %v776_v60 = vadd.f32 %v770_v28, %v717_v55 }
 0x193   :  { %v714_v32 = vpop.f32.mrf.mxu0  ;;  %v773_v34 = vpop.f32.mrf.mxu1 }
 0x195   :  { %v2244_v35 = vpop.f32.mrf.mxu0  ;;  %v2250_v13 = vpop.f32.mrf.mxu1 }
 0x197   :  { %v829_v36 = vpop.f32.mrf.mxu0  ;;  %v888_v14 = vpop.f32.mrf.mxu1 }
 0x198   :  { %v835_v62 = vadd.f32 %v829_v36, %v776_v60 }
 0x199   :  { %v2255_v38 = vpop.f32.mrf.mxu0  ;;  %v2261_v40 = vpop.f32.mrf.mxu1 }
 0x19a   :  { %v894_v1 = vadd.f32 %v888_v14, %v835_v62 }
 0x19b   :  { %v832_v41 = vpop.f32.mrf.mxu0  ;;  %v891_v42 = vpop.f32.mrf.mxu1 }
 0x19d   :  { %v2256_v43 = vpop.f32.mrf.mxu0  ;;  %v2262_v45 = vpop.f32.mrf.mxu1 }
 0x19f   :  { %v947_v46 = vpop.f32.mrf.mxu0  ;;  %v1006_v48 = vpop.f32.mrf.mxu1 }
 0x1a0   :  { %v953_v3 = vadd.f32 %v947_v46, %v894_v1 }
 0x1a1   :  { %v2267_v49 = vpop.f32.mrf.mxu0  ;;  %v2273_v50 = vpop.f32.mrf.mxu1 }
 0x1a2   :  { %v1012_v6 = vadd.f32 %v1006_v48, %v953_v3 }
 0x1a3   :  { %v950_v51 = vpop.f32.mrf.mxu0  ;;  %v1009_v53 = vpop.f32.mrf.mxu1 }
 0x1a5   :  { %v2268_v54 = vpop.f32.mrf.mxu0  ;;  %v2274_v56 = vpop.f32.mrf.mxu1 }
 0x1a7   :  { %v1065_v57 = vpop.f32.mrf.mxu0  ;;  %v1124_v58 = vpop.f32.mrf.mxu1 }
 0x1a8   :  { %v1071_v9 = vadd.f32 %v1065_v57, %v1012_v6 }
 0x1a9   :  { %v2279_v59 = vpop.f32.mrf.mxu0  ;;  %v2285_v17 = vpop.f32.mrf.mxu1 }
 0x1aa   :  { %v1130_v22 = vadd.f32 %v1124_v58, %v1071_v9 }
 0x1ab   :  { %v1068_v61 = vpop.f32.mrf.mxu0  ;;  %v1127_v18 = vpop.f32.mrf.mxu1 }
 0x1ad   :  { %v2280_v63 = vpop.f32.mrf.mxu0  ;;  %v2286_v0 = vpop.f32.mrf.mxu1 }
 0x1af   :  { %v1184_v19 = vpop.f32.mrf.mxu0  ;;  %v1243_v20 = vpop.f32.mrf.mxu1 }
 0x1b0   :  { %v1190_v25 = vadd.f32 %v1184_v19, %v1130_v22 }
 0x1b1   :  { %v2291_v2 = vpop.f32.mrf.mxu0  ;;  %v2297_v15 = vpop.f32.mrf.mxu1 }
 0x1b2   :  { %v1249_v30 = vadd.f32 %v1243_v20, %v1190_v25 }
 0x1b3   :  { %v1187_v4 = vpop.f32.mrf.mxu0  ;;  %v1246_v16 = vpop.f32.mrf.mxu1 }
 0x1b5   :  { %v2292_v5 = vpop.f32.mrf.mxu0  ;;  %v2298_v7 = vpop.f32.mrf.mxu1 }
 0x1b7   :  { %v1302_v8 = vpop.f32.mrf.mxu0  ;;  %v1361_v10 = vpop.f32.mrf.mxu1 }
 0x1b8   :  { %v1308_v33 = vadd.f32 %v1302_v8, %v1249_v30 }
 0x1b9   :  { %v2303_v11 = vpop.f32.mrf.mxu0  ;;  %v2309_v12 = vpop.f32.mrf.mxu1 }
 0x1ba   :  { %v1367_v37 = vadd.f32 %v1361_v10, %v1308_v33 }
 0x1bb   :  { %v1305_v21 = vpop.f32.mrf.mxu0  ;;  %v1364_v23 = vpop.f32.mrf.mxu1 }
 0x1bd   :  { %v2304_v24 = vpop.f32.mrf.mxu0  ;;  %v2310_v26 = vpop.f32.mrf.mxu1 }
 0x1bf   :  { %v1420_v27 = vpop.f32.mrf.mxu0  ;;  %v1479_v28 = vpop.f32.mrf.mxu1 }
 0x1c0   :  { %v1426_v39 = vadd.f32 %v1420_v27, %v1367_v37 }
 0x1c1   :  { %v2315_v29 = vpop.f32.mrf.mxu0  ;;  %v2321_v31 = vpop.f32.mrf.mxu1 }
 0x1c2   :  { %v1485_v44 = vadd.f32 %v1479_v28, %v1426_v39 }
 0x1c3   :  { %v1423_v32 = vpop.f32.mrf.mxu0  ;;  %v1482_v34 = vpop.f32.mrf.mxu1 }
 0x1c5   :  { %v2316_v35 = vpop.f32.mrf.mxu0  ;;  %v2322_v13 = vpop.f32.mrf.mxu1 }
 0x1c7   :  { %v1538_v36 = vpop.f32.mrf.mxu0  ;;  %v1597_v14 = vpop.f32.mrf.mxu1 }
 0x1c8   :  { %v1544_v47 = vadd.f32 %v1538_v36, %v1485_v44 }
 0x1c9   :  { %v2327_v38 = vpop.f32.mrf.mxu0  ;;  %v2333_v40 = vpop.f32.mrf.mxu1 }
 0x1ca   :  { %v1603_v52 = vadd.f32 %v1597_v14, %v1544_v47 }
 0x1cb   :  { %v1541_v41 = vpop.f32.mrf.mxu0  ;;  %v1600_v42 = vpop.f32.mrf.mxu1 }
 0x1cd   :  { %v2328_v43 = vpop.f32.mrf.mxu0  ;;  %v2334_v45 = vpop.f32.mrf.mxu1 }
 0x1cf   :  { %v1657_v46 = vpop.f32.mrf.mxu0  ;;  %v1716_v48 = vpop.f32.mrf.mxu1 }
 0x1d0   :  { %v1663_v55 = vadd.f32 %v1657_v46, %v1603_v52 }
 0x1d1   :  { %v2339_v49 = vpop.f32.mrf.mxu0  ;;  %v2345_v50 = vpop.f32.mrf.mxu1 }
 0x1d2   :  { %v1722_v60 = vadd.f32 %v1716_v48, %v1663_v55 }
 0x1d3   :  { %v1660_v51 = vpop.f32.mrf.mxu0  ;;  %v1719_v53 = vpop.f32.mrf.mxu1 }
 0x1d5   :  { %v2340_v54 = vpop.f32.mrf.mxu0  ;;  %v2346_v56 = vpop.f32.mrf.mxu1 }
 0x1d7   :  { %v1775_v57 = vpop.f32.mrf.mxu0  ;;  %v1834_v58 = vpop.f32.mrf.mxu1 }
 0x1d8   :  { %v1781_v62 = vadd.f32 %v1775_v57, %v1722_v60 }
 0x1d9   :  { %v2351_v59 = vpop.f32.mrf.mxu0  ;;  %v2357_v17 = vpop.f32.mrf.mxu1 }
 0x1da   :  { %v1840_v1 = vadd.f32 %v1834_v58, %v1781_v62 }
 0x1db   :  { %v1778_v61 = vpop.f32.mrf.mxu0  ;;  %v1837_v18 = vpop.f32.mrf.mxu1 }
 0x1dd   :  { %v2352_v63 = vpop.f32.mrf.mxu0  ;;  %v2358_v0 = vpop.f32.mrf.mxu1 }
 0x1df   :  { %v1893_v19 = vpop.f32.mrf.mxu0  ;;  %v1952_v20 = vpop.f32.mrf.mxu1 }
 0x1e0   :  { %v1899_v3 = vadd.f32 %v1893_v19, %v1840_v1 }
 0x1e1   :  { %v2363_v2 = vpop.f32.mrf.mxu0  ;;  %v2369_v15 = vpop.f32.mrf.mxu1 }
 0x1e2   :  { %v1958_v6 = vadd.f32 %v1952_v20, %v1899_v3 }
 0x1e3   :  { %v1896_v4 = vpop.f32.mrf.mxu0  ;;  %v1955_v16 = vpop.f32.mrf.mxu1 }
 0x1e5   :  { %v2364_v5 = vpop.f32.mrf.mxu0  ;;  %v2370_v7 = vpop.f32.mrf.mxu1 }
 0x1e7   :  { %v2011_v8 = vpop.f32.mrf.mxu0  ;;  %v2070_v10 = vpop.f32.mrf.mxu1 }
 0x1e8   :  { %v2017_v9 = vadd.f32 %v2011_v8, %v1958_v6 }
 0x1e9   :  { %v2375_v11 = vpop.f32.mrf.mxu0  ;;  %v2381_v21 = vpop.f32.mrf.mxu1 }
 0x1ea   :  { %v2076_v12 = vadd.f32 %v2070_v10, %v2017_v9 }
 0x1eb   :  { %v2014_v22 = vpop.f32.mrf.mxu0  ;;  %v2073_v24 = vpop.f32.mrf.mxu1 }
 0x1ec   :  { %v2077_v23 = vpack.c.bf16 %v2076_v12, %v2076_v12 }
 0x1ed   :  { %v2376_v25 = vpop.f32.mrf.mxu0  ;;  %v2382_v26 = vpop.f32.mrf.mxu1 }
 0x1ee   :  { %2078 = vst [vmem:[#allocation8] sm:$0x1] %v2077_v23 }
 0x1ef   :  { %2444 = shalt.err (!%p2441_p0)
}
 0x1f0   :  { %2088 = dma.vmem_to_hbm [thread:$0]  %s2086_s23, 16, %s2759_s2, [#allocation5]  }
 0x1f1   :  { %2457 = dma.done.wait [#allocation5], 16  }
 0x1f2   :  { %2458 = vsyncadd [#allocation5], 4294967280 }
 0x1f3   :  { %2092 = vsyncpa [#allocation4], 1 }
 0x1f4   :  { %2093 = vsyncpa [#allocation7], 1 }
 0x1f5   :  { %2094 = vsyncpa [#allocation5], 1 }

</bundles_post_ra>
